<compile_context>
chip_gen: v6e
topology: v6e:2x2x1
jax: 0.10.0
libtpu: 0.0.40
codegen_flags: <defaults>
</compile_context>

<pallas_src>
import math

import numpy as np
import jax
import jax.numpy as jnp
from jax import lax
from jax.experimental import pallas as pl
from jax.experimental.pallas import tpu as pltpu


def _make_kernel(T, E, H, num_layers, C1, C2, K, pad, Bt):
    T1 = T + 2 * pad - K + 1          # length after conv1
    T2 = T1 + 2 * pad - K + 1         # length after conv2
    assert T2 == T, "conv kernel/padding must preserve seq length for the bmm"

    def kernel(*refs):
        idx = 0
        x_ref = refs[idx]; idx += 1                           # (T*Bt, E) time-major
        lstm_w = []
        for _ in range(num_layers):
            lstm_w.append((refs[idx], refs[idx + 1], refs[idx + 2]))
            idx += 3
        w1_ref, b1_ref, w2_ref, b2_ref = refs[idx:idx + 4]; idx += 4
        out_ref = refs[idx]; idx += 1                         # (Bt, C2, H)
        gates_scr = refs[idx]; idx += 1                       # (T*Bt, 4H) f32
        pad1_scr = refs[idx]; idx += 1                        # ((T+2p)*Bt, H) f32
        pad2_scr = refs[idx]; idx += 1                        # ((T1+2p)*Bt, C1) f32
        a2_scr = refs[idx]; idx += 1                          # (T*Bt, C2) f32
        hseq_scr = refs[idx] if num_layers > 1 else None      # (T*Bt, H) f32

        # ---------------- stacked LSTM (Bt batch elements at once) ------------
        for layer in range(num_layers):
            w_ih_ref, w_hh_ref, b_ref = lstm_w[layer]
            last = layer == num_layers - 1

            # hoisted input projection: one MXU call for all T timesteps
            xin = x_ref[...] if layer == 0 else hseq_scr[...]
            gates_scr[...] = (
                jnp.dot(xin, w_ih_ref[...], preferred_element_type=jnp.float32)
                + b_ref[...])

            h = jnp.zeros((Bt, H), jnp.float32)
            c = jnp.zeros((Bt, H), jnp.float32)
            for t in range(T):                                 # static unroll
                g = gates_scr[pl.ds(t * Bt, Bt), :] + jnp.dot(
                    h, w_hh_ref[...], preferred_element_type=jnp.float32)
                # NOTE: gate slices are lane-aligned whenever H is a multiple
                # of 128; at toy H they lower to masked lane selects.
                i_g = jax.nn.sigmoid(g[:, 0:H])
                f_g = jax.nn.sigmoid(g[:, H:2 * H])
                g_g = jnp.tanh(g[:, 2 * H:3 * H])
                o_g = jax.nn.sigmoid(g[:, 3 * H:4 * H])
                c = f_g * c + i_g * g_g
                h = o_g * jnp.tanh(c)
                if last:
                    # write straight into the padded conv1 input buffer
                    pad1_scr[pl.ds((pad + t) * Bt, Bt), :] = h
                else:
                    hseq_scr[pl.ds(t * Bt, Bt), :] = h

        # dropout: identity (eval mode)

        # ---------------- conv1 (H -> C1) + ReLU --------------------------------
        if pad > 0:                                            # boundary rows only
            pad1_scr[pl.ds(0, pad * Bt), :] = jnp.zeros((pad * Bt, H), jnp.float32)
            pad1_scr[pl.ds((pad + T) * Bt, pad * Bt), :] = jnp.zeros(
                (pad * Bt, H), jnp.float32)
        acc1 = jnp.zeros((T1 * Bt, C1), jnp.float32)
        for k in range(K):
            acc1 = acc1 + jnp.dot(
                pad1_scr[pl.ds(k * Bt, T1 * Bt), :].astype(jnp.bfloat16),
                w1_ref[k], preferred_element_type=jnp.float32)
        a1 = jnp.maximum(acc1 + b1_ref[...], 0.0)              # (T1*Bt, C1)

        # ---------------- conv2 (C1 -> C2) --------------------------------------
        if pad > 0:
            pad2_scr[pl.ds(0, pad * Bt), :] = jnp.zeros((pad * Bt, C1), jnp.float32)
            pad2_scr[pl.ds((pad + T1) * Bt, pad * Bt), :] = jnp.zeros(
                (pad * Bt, C1), jnp.float32)
        pad2_scr[pl.ds(pad * Bt, T1 * Bt), :] = a1
        acc2 = jnp.zeros((T2 * Bt, C2), jnp.float32)
        for k in range(K):
            acc2 = acc2 + jnp.dot(
                pad2_scr[pl.ds(k * Bt, T2 * Bt), :].astype(jnp.bfloat16),
                w2_ref[k], preferred_element_type=jnp.float32)
        a2_scr[...] = acc2 + b2_ref[...]                       # (T*Bt, C2)

        # ---------------- per-batch softmax over time + bmm ---------------------
        for b in range(Bt):                                    # Bt is small, static
            a2_b = a2_scr[pl.ds(b, T, stride=Bt), :]           # (T, C2)
            m = jnp.max(a2_b, axis=0, keepdims=True)
            e = jnp.exp(a2_b - m)
            inv = pl.reciprocal(jnp.sum(e, axis=0, keepdims=True), approx=True)
            p_b = (e * inv).astype(jnp.bfloat16)               # (T, C2)
            lstm_b = pad1_scr[pl.ds(pad * Bt + b, T, stride=Bt), :].astype(
                jnp.bfloat16)                                  # (T, H)
            # contract the time (sublane) dim directly -- no explicit transpose
            feat_b = lax.dot_general(
                p_b, lstm_b,
                dimension_numbers=(((0,), (0,)), ((), ())),
                preferred_element_type=jnp.float32)            # (C2, H)
            out_ref[b] = feat_b

    return kernel


def attention_text_embedding(x, params, *, hidden_dim, num_layers,
                             conv1_out, conv2_out, kernel_size, padding):
    B, T, E = x.shape
    H, C1, C2, K, pad = hidden_dim, conv1_out, conv2_out, kernel_size, padding
    T1 = T + 2 * pad - K + 1

    # batch blocking: process Bt batch elements per grid step
    Bt = min(B, 8)
    while B % Bt:
        Bt -= 1
    nb = B // Bt

    kernel = _make_kernel(T, E, H, num_layers, C1, C2, K, pad, Bt)

    # time-major, batch-blocked input: block i, row t*Bt + j  ==  x[i*Bt + j, t]
    x_tm = jnp.transpose(x, (1, 0, 2)).reshape(T, nb, Bt, E)
    x_tm = jnp.transpose(x_tm, (1, 0, 2, 3)).reshape(nb, T * Bt, E)

    inputs = [x_tm]
    in_specs = [pl.BlockSpec((None, T * Bt, E), lambda i: (i, 0, 0))]
    for l in range(num_layers):
        w_ih_t, w_hh_t, bias = params["lstm"][l]
        inputs += [w_ih_t, w_hh_t, bias]
        in_specs += [
            pl.BlockSpec(w_ih_t.shape, lambda i: (0, 0)),
            pl.BlockSpec(w_hh_t.shape, lambda i: (0, 0)),
            pl.BlockSpec(bias.shape, lambda i: (0, 0)),
        ]
    w1t, b1, w2t, b2 = params["conv"]
    # bf16 conv weights: MXU-native operands, half the weight DMA bytes
    inputs += [w1t.astype(jnp.bfloat16), b1, w2t.astype(jnp.bfloat16), b2]
    in_specs += [
        pl.BlockSpec(w1t.shape, lambda i: (0, 0, 0)),
        pl.BlockSpec(b1.shape, lambda i: (0, 0)),
        pl.BlockSpec(w2t.shape, lambda i: (0, 0, 0)),
        pl.BlockSpec(b2.shape, lambda i: (0, 0)),
    ]

    scratch_shapes = [
        pltpu.VMEM((T * Bt, 4 * H), jnp.float32),              # hoisted gate pre-acts
        pltpu.VMEM(((T + 2 * pad) * Bt, H), jnp.float32),      # padded conv1 in / lstm out
        pltpu.VMEM(((T1 + 2 * pad) * Bt, C1), jnp.float32),    # padded conv2 input
        pltpu.VMEM((T * Bt, C2), jnp.float32),                 # conv2 output (attn logits)
    ]
    if num_layers > 1:
        scratch_shapes.append(pltpu.VMEM((T * Bt, H), jnp.float32))  # inter-layer hseq

    out = pl.pallas_call(
        kernel,
        out_shape=jax.ShapeDtypeStruct((B, C2, H), jnp.float32),
        grid_spec=pltpu.PrefetchScalarGridSpec(
            num_scalar_prefetch=0,
            grid=(nb,),
            in_specs=in_specs,
            out_specs=pl.BlockSpec((Bt, C2, H), lambda i: (i, 0, 0)),
            scratch_shapes=scratch_shapes,
        ),
        compiler_params=pltpu.CompilerParams(
            dimension_semantics=("parallel",)),                # batch blocks independent
    )(*inputs)
    # torch view(batch, -1): row-major flatten of (C2, H)
    return out.reshape(B, C2 * H)


# -------------------------- pure-JAX reference ---------------------------------
def reference(x, params, H, num_layers, K, pad):
    B, T, _ = x.shape
    layer_in = x
    for l in range(num_layers):
        w_ih_t, w_hh_t, bias = params["lstm"][l]

        def step(carry, x_t):
            h, c = carry
            gates = x_t @ w_ih_t + h @ w_hh_t + bias[0]
            i, f, g, o = jnp.split(gates, 4, axis=-1)
            c = jax.nn.sigmoid(f) * c + jax.nn.sigmoid(i) * jnp.tanh(g)
            h = jax.nn.sigmoid(o) * jnp.tanh(c)
            return (h, c), h

        h0 = jnp.zeros((B, H), jnp.float32)
        c0 = jnp.zeros((B, H), jnp.float32)
        _, ys = lax.scan(step, (h0, c0), jnp.swapaxes(layer_in, 0, 1))
        layer_in = jnp.swapaxes(ys, 0, 1)
    lstm_out = layer_in                                    # (B, T, H)

    w1t, b1, w2t, b2 = params["conv"]

    def conv1d(inp, wt, b):
        Tin = inp.shape[1]
        Tout = Tin + 2 * pad - K + 1
        padded = jnp.pad(inp, ((0, 0), (pad, pad), (0, 0)))
        acc = jnp.zeros((inp.shape[0], Tout, wt.shape[2]), jnp.float32)
        for k in range(K):
            acc = acc + jnp.einsum("btc,cd->btd", padded[:, k:k + Tout, :], wt[k])
        return acc + b[0]

    a1 = jax.nn.relu(conv1d(lstm_out, w1t, b1))
    a2 = conv1d(a1, w2t, b2)                               # (B, T, C2)
    p = jax.nn.softmax(a2, axis=1)                         # softmax over time
    feat = jnp.einsum("btc,bth->bch", p, lstm_out)         # bmm
    return feat.reshape(B, -1)


if __name__ == "__main__":
    B, T, E = 2, 8, 32           # batch, seq, embedding_dim
    H = 32                       # hidden_dim
    num_layers = 1               # SAEmbedding uses a single-layer LSTM
    C1, C2 = 16, 2               # conv1_out, conv2_out (num pooled attn heads)
    K, pad = 1, 0                # kernel_size, padding

    key = jax.random.PRNGKey(0)
    keys = jax.random.split(key, 4 * num_layers + 6)
    kidx = 0

    params = {"lstm": [], "conv": None}
    scale = 1.0 / math.sqrt(H)
    for l in range(num_layers):
        in_l = E if l == 0 else H
        w_ih_t = jax.random.uniform(keys[kidx], (in_l, 4 * H),
                                    minval=-scale, maxval=scale); kidx += 1
        w_hh_t = jax.random.uniform(keys[kidx], (H, 4 * H),
                                    minval=-scale, maxval=scale); kidx += 1
        bias = jax.random.uniform(keys[kidx], (1, 4 * H),
                                  minval=-scale, maxval=scale); kidx += 1
        params["lstm"].append((w_ih_t.astype(jnp.float32),
                               w_hh_t.astype(jnp.float32),
                               bias.astype(jnp.float32)))

    # conv weights round-tripped through bf16 so the bf16-operand kernel and the
    # f32 reference see identical effective weights
    w1t = ((jax.random.normal(keys[kidx], (K, H, C1)) * 0.1)
           .astype(jnp.bfloat16).astype(jnp.float32)); kidx += 1
    b1 = (jax.random.normal(keys[kidx], (1, C1)) * 0.1).astype(jnp.float32); kidx += 1
    w2t = ((jax.random.normal(keys[kidx], (K, C1, C2)) * 0.1)
           .astype(jnp.bfloat16).astype(jnp.float32)); kidx += 1
    b2 = (jax.random.normal(keys[kidx], (1, C2)) * 0.1).astype(jnp.float32); kidx += 1
    params["conv"] = (w1t, b1, w2t, b2)

    x = jax.random.normal(keys[kidx], (B, T, E), dtype=jnp.float32)

    out = attention_text_embedding(
        x, params, hidden_dim=H, num_layers=num_layers,
        conv1_out=C1, conv2_out=C2, kernel_size=K, padding=pad)
    out = jax.block_until_ready(out)

    ref = reference(x, params, H, num_layers, K, pad)
    np.testing.assert_allclose(np.asarray(out), np.asarray(ref), rtol=2e-2, atol=2e-2)
    print("KERNEL_OK")
</pallas_src>

<mosaic_0001>
module attributes {stable_mosaic.version = 11 : i64} {
  func.func @kernel(%arg0: i32, %arg1: memref<1x16x32xf32, #tpu.memory_space<vmem>>, %arg2: memref<32x128xf32, #tpu.memory_space<vmem>>, %arg3: memref<32x128xf32, #tpu.memory_space<vmem>>, %arg4: memref<1x128xf32, #tpu.memory_space<vmem>>, %arg5: memref<1x32x16xbf16, #tpu.memory_space<vmem>>, %arg6: memref<1x16xf32, #tpu.memory_space<vmem>>, %arg7: memref<1x16x2xbf16, #tpu.memory_space<vmem>>, %arg8: memref<1x2xf32, #tpu.memory_space<vmem>>, %arg9: memref<2x2x32xf32, #tpu.memory_space<vmem>>, %arg10: memref<16x128xf32, #tpu.memory_space<vmem>>, %arg11: memref<16x32xf32, #tpu.memory_space<vmem>>, %arg12: memref<16x16xf32, #tpu.memory_space<vmem>>, %arg13: memref<16x2xf32, #tpu.memory_space<vmem>>) attributes {dimension_semantics = [#tpu.dimension_semantics<parallel>], iteration_bounds = array<i64: 1>, scalar_prefetch = 0 : i64, scratch_operands = 4 : i64, tpu.core_type = #tpu.core_type<tc>, window_params = [{transform_indices = @transform_0, window_bounds = array<i64: 1, 16, 32>}, {pipeline_mode = #tpu.pipeline_mode<synchronous>, transform_indices = @transform_1, window_bounds = array<i64: 32, 128>}, {pipeline_mode = #tpu.pipeline_mode<synchronous>, transform_indices = @transform_2, window_bounds = array<i64: 32, 128>}, {pipeline_mode = #tpu.pipeline_mode<synchronous>, transform_indices = @transform_3, window_bounds = array<i64: 1, 128>}, {pipeline_mode = #tpu.pipeline_mode<synchronous>, transform_indices = @transform_4, window_bounds = array<i64: 1, 32, 16>}, {pipeline_mode = #tpu.pipeline_mode<synchronous>, transform_indices = @transform_5, window_bounds = array<i64: 1, 16>}, {pipeline_mode = #tpu.pipeline_mode<synchronous>, transform_indices = @transform_6, window_bounds = array<i64: 1, 16, 2>}, {pipeline_mode = #tpu.pipeline_mode<synchronous>, transform_indices = @transform_7, window_bounds = array<i64: 1, 2>}, {transform_indices = @transform_8, window_bounds = array<i64: 2, 2, 32>}]} {
    %c0 = arith.constant 0 : index
    %c0_0 = arith.constant 0 : index
    %c0_1 = arith.constant 0 : index
    %0 = vector.load %arg1[%c0, %c0_0, %c0_1] : memref<1x16x32xf32, #tpu.memory_space<vmem>>, vector<1x16x32xf32>
    %1 = vector.shape_cast %0 : vector<1x16x32xf32> to vector<16x32xf32>
    %c0_2 = arith.constant 0 : index
    %c0_3 = arith.constant 0 : index
    %2 = vector.load %arg2[%c0_2, %c0_3] : memref<32x128xf32, #tpu.memory_space<vmem>>, vector<32x128xf32>
    %cst = arith.constant dense<0.000000e+00> : vector<16x128xf32>
    %3 = tpu.matmul %1, %2, %cst {dimension_numbers = #tpu.dot_dimension_numbers<[1], [0], [0], [1], [0, 0, 1, 1], [], []>} : vector<16x32xf32>, vector<32x128xf32>, vector<16x128xf32> -> vector<16x128xf32>
    %c0_4 = arith.constant 0 : index
    %c0_5 = arith.constant 0 : index
    %4 = vector.load %arg4[%c0_4, %c0_5] : memref<1x128xf32, #tpu.memory_space<vmem>>, vector<1x128xf32>
    %5 = vector.broadcast %4 : vector<1x128xf32> to vector<16x128xf32>
    %6 = arith.addf %3, %5 : vector<16x128xf32>
    %c0_6 = arith.constant 0 : index
    %c0_7 = arith.constant 0 : index
    %7 = vector.load %arg10[%c0_6, %c0_7] : memref<16x128xf32, #tpu.memory_space<vmem>>, vector<16x128xf32>
    tpu.vector_store %arg10[%c0_6, %c0_7], %6 {strides = array<i32>} : memref<16x128xf32, #tpu.memory_space<vmem>>, vector<16x128xf32>,
    %cst_8 = arith.constant 0.000000e+00 : f32
    %8 = vector.broadcast %cst_8 : f32 to vector<2x32xf32>
    %cst_9 = arith.constant 0.000000e+00 : f32
    %9 = vector.broadcast %cst_9 : f32 to vector<2x32xf32>
    %c0_10 = arith.constant 0 : index
    %c0_11 = arith.constant 0 : index
    %10 = vector.load %arg10[%c0_10, %c0_11] : memref<16x128xf32, #tpu.memory_space<vmem>>, vector<2x128xf32>
    %c0_12 = arith.constant 0 : index
    %c0_13 = arith.constant 0 : index
    %11 = vector.load %arg3[%c0_12, %c0_13] : memref<32x128xf32, #tpu.memory_space<vmem>>, vector<32x128xf32>
    %cst_14 = arith.constant dense<0.000000e+00> : vector<2x128xf32>
    %12 = tpu.matmul %8, %11, %cst_14 {dimension_numbers = #tpu.dot_dimension_numbers<[1], [0], [0], [1], [0, 0, 1, 1], [], []>} : vector<2x32xf32>, vector<32x128xf32>, vector<2x128xf32> -> vector<2x128xf32>
    %13 = arith.addf %10, %12 : vector<2x128xf32>
    %14 = vector.extract_strided_slice %13 {offsets = [0, 0], sizes = [2, 32], strides = [1, 1]} : vector<2x128xf32> to vector<2x32xf32>
    %15 = arith.negf %14 : vector<2x32xf32>
    %16 = math.exp %15 : vector<2x32xf32>
    %cst_15 = arith.constant 1.000000e+00 : f32
    %17 = vector.broadcast %cst_15 : f32 to vector<2x32xf32>
    %18 = arith.addf %17, %16 : vector<2x32xf32>
    %19 = arith.divf %17, %18 : vector<2x32xf32>
    %20 = vector.extract_strided_slice %13 {offsets = [0, 32], sizes = [2, 32], strides = [1, 1]} : vector<2x128xf32> to vector<2x32xf32>
    %21 = arith.negf %20 : vector<2x32xf32>
    %22 = math.exp %21 : vector<2x32xf32>
    %cst_16 = arith.constant 1.000000e+00 : f32
    %23 = vector.broadcast %cst_16 : f32 to vector<2x32xf32>
    %24 = arith.addf %23, %22 : vector<2x32xf32>
    %25 = arith.divf %23, %24 : vector<2x32xf32>
    %26 = vector.extract_strided_slice %13 {offsets = [0, 64], sizes = [2, 32], strides = [1, 1]} : vector<2x128xf32> to vector<2x32xf32>
    %27 = math.tanh %26 : vector<2x32xf32>
    %28 = vector.extract_strided_slice %13 {offsets = [0, 96], sizes = [2, 32], strides = [1, 1]} : vector<2x128xf32> to vector<2x32xf32>
    %29 = arith.negf %28 : vector<2x32xf32>
    %30 = math.exp %29 : vector<2x32xf32>
    %cst_17 = arith.constant 1.000000e+00 : f32
    %31 = vector.broadcast %cst_17 : f32 to vector<2x32xf32>
    %32 = arith.addf %31, %30 : vector<2x32xf32>
    %33 = arith.divf %31, %32 : vector<2x32xf32>
    %34 = arith.mulf %25, %9 : vector<2x32xf32>
    %35 = arith.mulf %19, %27 : vector<2x32xf32>
    %36 = arith.addf %34, %35 : vector<2x32xf32>
    %37 = math.tanh %36 : vector<2x32xf32>
    %38 = arith.mulf %33, %37 : vector<2x32xf32>
    %c0_18 = arith.constant 0 : index
    %c0_19 = arith.constant 0 : index
    %39 = vector.load %arg11[%c0_18, %c0_19] : memref<16x32xf32, #tpu.memory_space<vmem>>, vector<2x32xf32>
    tpu.vector_store %arg11[%c0_18, %c0_19], %38 {strides = array<i32>} : memref<16x32xf32, #tpu.memory_space<vmem>>, vector<2x32xf32>,
    %c2 = arith.constant 2 : index
    %c0_20 = arith.constant 0 : index
    %40 = vector.load %arg10[%c2, %c0_20] : memref<16x128xf32, #tpu.memory_space<vmem>>, vector<2x128xf32>
    %c0_21 = arith.constant 0 : index
    %c0_22 = arith.constant 0 : index
    %41 = vector.load %arg3[%c0_21, %c0_22] : memref<32x128xf32, #tpu.memory_space<vmem>>, vector<32x128xf32>
    %cst_23 = arith.constant dense<0.000000e+00> : vector<2x128xf32>
    %42 = tpu.matmul %38, %41, %cst_23 {dimension_numbers = #tpu.dot_dimension_numbers<[1], [0], [0], [1], [0, 0, 1, 1], [], []>} : vector<2x32xf32>, vector<32x128xf32>, vector<2x128xf32> -> vector<2x128xf32>
    %43 = arith.addf %40, %42 : vector<2x128xf32>
    %44 = vector.extract_strided_slice %43 {offsets = [0, 0], sizes = [2, 32], strides = [1, 1]} : vector<2x128xf32> to vector<2x32xf32>
    %45 = arith.negf %44 : vector<2x32xf32>
    %46 = math.exp %45 : vector<2x32xf32>
    %cst_24 = arith.constant 1.000000e+00 : f32
    %47 = vector.broadcast %cst_24 : f32 to vector<2x32xf32>
    %48 = arith.addf %47, %46 : vector<2x32xf32>
    %49 = arith.divf %47, %48 : vector<2x32xf32>
    %50 = vector.extract_strided_slice %43 {offsets = [0, 32], sizes = [2, 32], strides = [1, 1]} : vector<2x128xf32> to vector<2x32xf32>
    %51 = arith.negf %50 : vector<2x32xf32>
    %52 = math.exp %51 : vector<2x32xf32>
    %cst_25 = arith.constant 1.000000e+00 : f32
    %53 = vector.broadcast %cst_25 : f32 to vector<2x32xf32>
    %54 = arith.addf %53, %52 : vector<2x32xf32>
    %55 = arith.divf %53, %54 : vector<2x32xf32>
    %56 = vector.extract_strided_slice %43 {offsets = [0, 64], sizes = [2, 32], strides = [1, 1]} : vector<2x128xf32> to vector<2x32xf32>
    %57 = math.tanh %56 : vector<2x32xf32>
    %58 = vector.extract_strided_slice %43 {offsets = [0, 96], sizes = [2, 32], strides = [1, 1]} : vector<2x128xf32> to vector<2x32xf32>
    %59 = arith.negf %58 : vector<2x32xf32>
    %60 = math.exp %59 : vector<2x32xf32>
    %cst_26 = arith.constant 1.000000e+00 : f32
    %61 = vector.broadcast %cst_26 : f32 to vector<2x32xf32>
    %62 = arith.addf %61, %60 : vector<2x32xf32>
    %63 = arith.divf %61, %62 : vector<2x32xf32>
    %64 = arith.mulf %55, %36 : vector<2x32xf32>
    %65 = arith.mulf %49, %57 : vector<2x32xf32>
    %66 = arith.addf %64, %65 : vector<2x32xf32>
    %67 = math.tanh %66 : vector<2x32xf32>
    %68 = arith.mulf %63, %67 : vector<2x32xf32>
    %c2_27 = arith.constant 2 : index
    %c0_28 = arith.constant 0 : index
    %69 = vector.load %arg11[%c2_27, %c0_28] : memref<16x32xf32, #tpu.memory_space<vmem>>, vector<2x32xf32>
    tpu.vector_store %arg11[%c2_27, %c0_28], %68 {strides = array<i32>} : memref<16x32xf32, #tpu.memory_space<vmem>>, vector<2x32xf32>,
    %c4 = arith.constant 4 : index
    %c0_29 = arith.constant 0 : index
    %70 = vector.load %arg10[%c4, %c0_29] : memref<16x128xf32, #tpu.memory_space<vmem>>, vector<2x128xf32>
    %c0_30 = arith.constant 0 : index
    %c0_31 = arith.constant 0 : index
    %71 = vector.load %arg3[%c0_30, %c0_31] : memref<32x128xf32, #tpu.memory_space<vmem>>, vector<32x128xf32>
    %cst_32 = arith.constant dense<0.000000e+00> : vector<2x128xf32>
    %72 = tpu.matmul %68, %71, %cst_32 {dimension_numbers = #tpu.dot_dimension_numbers<[1], [0], [0], [1], [0, 0, 1, 1], [], []>} : vector<2x32xf32>, vector<32x128xf32>, vector<2x128xf32> -> vector<2x128xf32>
    %73 = arith.addf %70, %72 : vector<2x128xf32>
    %74 = vector.extract_strided_slice %73 {offsets = [0, 0], sizes = [2, 32], strides = [1, 1]} : vector<2x128xf32> to vector<2x32xf32>
    %75 = arith.negf %74 : vector<2x32xf32>
    %76 = math.exp %75 : vector<2x32xf32>
    %cst_33 = arith.constant 1.000000e+00 : f32
    %77 = vector.broadcast %cst_33 : f32 to vector<2x32xf32>
    %78 = arith.addf %77, %76 : vector<2x32xf32>
    %79 = arith.divf %77, %78 : vector<2x32xf32>
    %80 = vector.extract_strided_slice %73 {offsets = [0, 32], sizes = [2, 32], strides = [1, 1]} : vector<2x128xf32> to vector<2x32xf32>
    %81 = arith.negf %80 : vector<2x32xf32>
    %82 = math.exp %81 : vector<2x32xf32>
    %cst_34 = arith.constant 1.000000e+00 : f32
    %83 = vector.broadcast %cst_34 : f32 to vector<2x32xf32>
    %84 = arith.addf %83, %82 : vector<2x32xf32>
    %85 = arith.divf %83, %84 : vector<2x32xf32>
    %86 = vector.extract_strided_slice %73 {offsets = [0, 64], sizes = [2, 32], strides = [1, 1]} : vector<2x128xf32> to vector<2x32xf32>
    %87 = math.tanh %86 : vector<2x32xf32>
    %88 = vector.extract_strided_slice %73 {offsets = [0, 96], sizes = [2, 32], strides = [1, 1]} : vector<2x128xf32> to vector<2x32xf32>
    %89 = arith.negf %88 : vector<2x32xf32>
    %90 = math.exp %89 : vector<2x32xf32>
    %cst_35 = arith.constant 1.000000e+00 : f32
    %91 = vector.broadcast %cst_35 : f32 to vector<2x32xf32>
    %92 = arith.addf %91, %90 : vector<2x32xf32>
    %93 = arith.divf %91, %92 : vector<2x32xf32>
    %94 = arith.mulf %85, %66 : vector<2x32xf32>
    %95 = arith.mulf %79, %87 : vector<2x32xf32>
    %96 = arith.addf %94, %95 : vector<2x32xf32>
    %97 = math.tanh %96 : vector<2x32xf32>
    %98 = arith.mulf %93, %97 : vector<2x32xf32>
    %c4_36 = arith.constant 4 : index
    %c0_37 = arith.constant 0 : index
    %99 = vector.load %arg11[%c4_36, %c0_37] : memref<16x32xf32, #tpu.memory_space<vmem>>, vector<2x32xf32>
    tpu.vector_store %arg11[%c4_36, %c0_37], %98 {strides = array<i32>} : memref<16x32xf32, #tpu.memory_space<vmem>>, vector<2x32xf32>,
    %c6 = arith.constant 6 : index
    %c0_38 = arith.constant 0 : index
    %100 = vector.load %arg10[%c6, %c0_38] : memref<16x128xf32, #tpu.memory_space<vmem>>, vector<2x128xf32>
    %c0_39 = arith.constant 0 : index
    %c0_40 = arith.constant 0 : index
    %101 = vector.load %arg3[%c0_39, %c0_40] : memref<32x128xf32, #tpu.memory_space<vmem>>, vector<32x128xf32>
    %cst_41 = arith.constant dense<0.000000e+00> : vector<2x128xf32>
    %102 = tpu.matmul %98, %101, %cst_41 {dimension_numbers = #tpu.dot_dimension_numbers<[1], [0], [0], [1], [0, 0, 1, 1], [], []>} : vector<2x32xf32>, vector<32x128xf32>, vector<2x128xf32> -> vector<2x128xf32>
    %103 = arith.addf %100, %102 : vector<2x128xf32>
    %104 = vector.extract_strided_slice %103 {offsets = [0, 0], sizes = [2, 32], strides = [1, 1]} : vector<2x128xf32> to vector<2x32xf32>
    %105 = arith.negf %104 : vector<2x32xf32>
    %106 = math.exp %105 : vector<2x32xf32>
    %cst_42 = arith.constant 1.000000e+00 : f32
    %107 = vector.broadcast %cst_42 : f32 to vector<2x32xf32>
    %108 = arith.addf %107, %106 : vector<2x32xf32>
    %109 = arith.divf %107, %108 : vector<2x32xf32>
    %110 = vector.extract_strided_slice %103 {offsets = [0, 32], sizes = [2, 32], strides = [1, 1]} : vector<2x128xf32> to vector<2x32xf32>
    %111 = arith.negf %110 : vector<2x32xf32>
    %112 = math.exp %111 : vector<2x32xf32>
    %cst_43 = arith.constant 1.000000e+00 : f32
    %113 = vector.broadcast %cst_43 : f32 to vector<2x32xf32>
    %114 = arith.addf %113, %112 : vector<2x32xf32>
    %115 = arith.divf %113, %114 : vector<2x32xf32>
    %116 = vector.extract_strided_slice %103 {offsets = [0, 64], sizes = [2, 32], strides = [1, 1]} : vector<2x128xf32> to vector<2x32xf32>
    %117 = math.tanh %116 : vector<2x32xf32>
    %118 = vector.extract_strided_slice %103 {offsets = [0, 96], sizes = [2, 32], strides = [1, 1]} : vector<2x128xf32> to vector<2x32xf32>
    %119 = arith.negf %118 : vector<2x32xf32>
    %120 = math.exp %119 : vector<2x32xf32>
    %cst_44 = arith.constant 1.000000e+00 : f32
    %121 = vector.broadcast %cst_44 : f32 to vector<2x32xf32>
    %122 = arith.addf %121, %120 : vector<2x32xf32>
    %123 = arith.divf %121, %122 : vector<2x32xf32>
    %124 = arith.mulf %115, %96 : vector<2x32xf32>
    %125 = arith.mulf %109, %117 : vector<2x32xf32>
    %126 = arith.addf %124, %125 : vector<2x32xf32>
    %127 = math.tanh %126 : vector<2x32xf32>
    %128 = arith.mulf %123, %127 : vector<2x32xf32>
    %c6_45 = arith.constant 6 : index
    %c0_46 = arith.constant 0 : index
    %129 = vector.load %arg11[%c6_45, %c0_46] : memref<16x32xf32, #tpu.memory_space<vmem>>, vector<2x32xf32>
    tpu.vector_store %arg11[%c6_45, %c0_46], %128 {strides = array<i32>} : memref<16x32xf32, #tpu.memory_space<vmem>>, vector<2x32xf32>,
    %c8 = arith.constant 8 : index
    %c0_47 = arith.constant 0 : index
    %130 = vector.load %arg10[%c8, %c0_47] : memref<16x128xf32, #tpu.memory_space<vmem>>, vector<2x128xf32>
    %c0_48 = arith.constant 0 : index
    %c0_49 = arith.constant 0 : index
    %131 = vector.load %arg3[%c0_48, %c0_49] : memref<32x128xf32, #tpu.memory_space<vmem>>, vector<32x128xf32>
    %cst_50 = arith.constant dense<0.000000e+00> : vector<2x128xf32>
    %132 = tpu.matmul %128, %131, %cst_50 {dimension_numbers = #tpu.dot_dimension_numbers<[1], [0], [0], [1], [0, 0, 1, 1], [], []>} : vector<2x32xf32>, vector<32x128xf32>, vector<2x128xf32> -> vector<2x128xf32>
    %133 = arith.addf %130, %132 : vector<2x128xf32>
    %134 = vector.extract_strided_slice %133 {offsets = [0, 0], sizes = [2, 32], strides = [1, 1]} : vector<2x128xf32> to vector<2x32xf32>
    %135 = arith.negf %134 : vector<2x32xf32>
    %136 = math.exp %135 : vector<2x32xf32>
    %cst_51 = arith.constant 1.000000e+00 : f32
    %137 = vector.broadcast %cst_51 : f32 to vector<2x32xf32>
    %138 = arith.addf %137, %136 : vector<2x32xf32>
    %139 = arith.divf %137, %138 : vector<2x32xf32>
    %140 = vector.extract_strided_slice %133 {offsets = [0, 32], sizes = [2, 32], strides = [1, 1]} : vector<2x128xf32> to vector<2x32xf32>
    %141 = arith.negf %140 : vector<2x32xf32>
    %142 = math.exp %141 : vector<2x32xf32>
    %cst_52 = arith.constant 1.000000e+00 : f32
    %143 = vector.broadcast %cst_52 : f32 to vector<2x32xf32>
    %144 = arith.addf %143, %142 : vector<2x32xf32>
    %145 = arith.divf %143, %144 : vector<2x32xf32>
    %146 = vector.extract_strided_slice %133 {offsets = [0, 64], sizes = [2, 32], strides = [1, 1]} : vector<2x128xf32> to vector<2x32xf32>
    %147 = math.tanh %146 : vector<2x32xf32>
    %148 = vector.extract_strided_slice %133 {offsets = [0, 96], sizes = [2, 32], strides = [1, 1]} : vector<2x128xf32> to vector<2x32xf32>
    %149 = arith.negf %148 : vector<2x32xf32>
    %150 = math.exp %149 : vector<2x32xf32>
    %cst_53 = arith.constant 1.000000e+00 : f32
    %151 = vector.broadcast %cst_53 : f32 to vector<2x32xf32>
    %152 = arith.addf %151, %150 : vector<2x32xf32>
    %153 = arith.divf %151, %152 : vector<2x32xf32>
    %154 = arith.mulf %145, %126 : vector<2x32xf32>
    %155 = arith.mulf %139, %147 : vector<2x32xf32>
    %156 = arith.addf %154, %155 : vector<2x32xf32>
    %157 = math.tanh %156 : vector<2x32xf32>
    %158 = arith.mulf %153, %157 : vector<2x32xf32>
    %c8_54 = arith.constant 8 : index
    %c0_55 = arith.constant 0 : index
    %159 = vector.load %arg11[%c8_54, %c0_55] : memref<16x32xf32, #tpu.memory_space<vmem>>, vector<2x32xf32>
    tpu.vector_store %arg11[%c8_54, %c0_55], %158 {strides = array<i32>} : memref<16x32xf32, #tpu.memory_space<vmem>>, vector<2x32xf32>,
    %c10 = arith.constant 10 : index
    %c0_56 = arith.constant 0 : index
    %160 = vector.load %arg10[%c10, %c0_56] : memref<16x128xf32, #tpu.memory_space<vmem>>, vector<2x128xf32>
    %c0_57 = arith.constant 0 : index
    %c0_58 = arith.constant 0 : index
    %161 = vector.load %arg3[%c0_57, %c0_58] : memref<32x128xf32, #tpu.memory_space<vmem>>, vector<32x128xf32>
    %cst_59 = arith.constant dense<0.000000e+00> : vector<2x128xf32>
    %162 = tpu.matmul %158, %161, %cst_59 {dimension_numbers = #tpu.dot_dimension_numbers<[1], [0], [0], [1], [0, 0, 1, 1], [], []>} : vector<2x32xf32>, vector<32x128xf32>, vector<2x128xf32> -> vector<2x128xf32>
    %163 = arith.addf %160, %162 : vector<2x128xf32>
    %164 = vector.extract_strided_slice %163 {offsets = [0, 0], sizes = [2, 32], strides = [1, 1]} : vector<2x128xf32> to vector<2x32xf32>
    %165 = arith.negf %164 : vector<2x32xf32>
    %166 = math.exp %165 : vector<2x32xf32>
    %cst_60 = arith.constant 1.000000e+00 : f32
    %167 = vector.broadcast %cst_60 : f32 to vector<2x32xf32>
    %168 = arith.addf %167, %166 : vector<2x32xf32>
    %169 = arith.divf %167, %168 : vector<2x32xf32>
    %170 = vector.extract_strided_slice %163 {offsets = [0, 32], sizes = [2, 32], strides = [1, 1]} : vector<2x128xf32> to vector<2x32xf32>
    %171 = arith.negf %170 : vector<2x32xf32>
    %172 = math.exp %171 : vector<2x32xf32>
    %cst_61 = arith.constant 1.000000e+00 : f32
    %173 = vector.broadcast %cst_61 : f32 to vector<2x32xf32>
    %174 = arith.addf %173, %172 : vector<2x32xf32>
    %175 = arith.divf %173, %174 : vector<2x32xf32>
    %176 = vector.extract_strided_slice %163 {offsets = [0, 64], sizes = [2, 32], strides = [1, 1]} : vector<2x128xf32> to vector<2x32xf32>
    %177 = math.tanh %176 : vector<2x32xf32>
    %178 = vector.extract_strided_slice %163 {offsets = [0, 96], sizes = [2, 32], strides = [1, 1]} : vector<2x128xf32> to vector<2x32xf32>
    %179 = arith.negf %178 : vector<2x32xf32>
    %180 = math.exp %179 : vector<2x32xf32>
    %cst_62 = arith.constant 1.000000e+00 : f32
    %181 = vector.broadcast %cst_62 : f32 to vector<2x32xf32>
    %182 = arith.addf %181, %180 : vector<2x32xf32>
    %183 = arith.divf %181, %182 : vector<2x32xf32>
    %184 = arith.mulf %175, %156 : vector<2x32xf32>
    %185 = arith.mulf %169, %177 : vector<2x32xf32>
    %186 = arith.addf %184, %185 : vector<2x32xf32>
    %187 = math.tanh %186 : vector<2x32xf32>
    %188 = arith.mulf %183, %187 : vector<2x32xf32>
    %c10_63 = arith.constant 10 : index
    %c0_64 = arith.constant 0 : index
    %189 = vector.load %arg11[%c10_63, %c0_64] : memref<16x32xf32, #tpu.memory_space<vmem>>, vector<2x32xf32>
    tpu.vector_store %arg11[%c10_63, %c0_64], %188 {strides = array<i32>} : memref<16x32xf32, #tpu.memory_space<vmem>>, vector<2x32xf32>,
    %c12 = arith.constant 12 : index
    %c0_65 = arith.constant 0 : index
    %190 = vector.load %arg10[%c12, %c0_65] : memref<16x128xf32, #tpu.memory_space<vmem>>, vector<2x128xf32>
    %c0_66 = arith.constant 0 : index
    %c0_67 = arith.constant 0 : index
    %191 = vector.load %arg3[%c0_66, %c0_67] : memref<32x128xf32, #tpu.memory_space<vmem>>, vector<32x128xf32>
    %cst_68 = arith.constant dense<0.000000e+00> : vector<2x128xf32>
    %192 = tpu.matmul %188, %191, %cst_68 {dimension_numbers = #tpu.dot_dimension_numbers<[1], [0], [0], [1], [0, 0, 1, 1], [], []>} : vector<2x32xf32>, vector<32x128xf32>, vector<2x128xf32> -> vector<2x128xf32>
    %193 = arith.addf %190, %192 : vector<2x128xf32>
    %194 = vector.extract_strided_slice %193 {offsets = [0, 0], sizes = [2, 32], strides = [1, 1]} : vector<2x128xf32> to vector<2x32xf32>
    %195 = arith.negf %194 : vector<2x32xf32>
    %196 = math.exp %195 : vector<2x32xf32>
    %cst_69 = arith.constant 1.000000e+00 : f32
    %197 = vector.broadcast %cst_69 : f32 to vector<2x32xf32>
    %198 = arith.addf %197, %196 : vector<2x32xf32>
    %199 = arith.divf %197, %198 : vector<2x32xf32>
    %200 = vector.extract_strided_slice %193 {offsets = [0, 32], sizes = [2, 32], strides = [1, 1]} : vector<2x128xf32> to vector<2x32xf32>
    %201 = arith.negf %200 : vector<2x32xf32>
    %202 = math.exp %201 : vector<2x32xf32>
    %cst_70 = arith.constant 1.000000e+00 : f32
    %203 = vector.broadcast %cst_70 : f32 to vector<2x32xf32>
    %204 = arith.addf %203, %202 : vector<2x32xf32>
    %205 = arith.divf %203, %204 : vector<2x32xf32>
    %206 = vector.extract_strided_slice %193 {offsets = [0, 64], sizes = [2, 32], strides = [1, 1]} : vector<2x128xf32> to vector<2x32xf32>
    %207 = math.tanh %206 : vector<2x32xf32>
    %208 = vector.extract_strided_slice %193 {offsets = [0, 96], sizes = [2, 32], strides = [1, 1]} : vector<2x128xf32> to vector<2x32xf32>
    %209 = arith.negf %208 : vector<2x32xf32>
    %210 = math.exp %209 : vector<2x32xf32>
    %cst_71 = arith.constant 1.000000e+00 : f32
    %211 = vector.broadcast %cst_71 : f32 to vector<2x32xf32>
    %212 = arith.addf %211, %210 : vector<2x32xf32>
    %213 = arith.divf %211, %212 : vector<2x32xf32>
    %214 = arith.mulf %205, %186 : vector<2x32xf32>
    %215 = arith.mulf %199, %207 : vector<2x32xf32>
    %216 = arith.addf %214, %215 : vector<2x32xf32>
    %217 = math.tanh %216 : vector<2x32xf32>
    %218 = arith.mulf %213, %217 : vector<2x32xf32>
    %c12_72 = arith.constant 12 : index
    %c0_73 = arith.constant 0 : index
    %219 = vector.load %arg11[%c12_72, %c0_73] : memref<16x32xf32, #tpu.memory_space<vmem>>, vector<2x32xf32>
    tpu.vector_store %arg11[%c12_72, %c0_73], %218 {strides = array<i32>} : memref<16x32xf32, #tpu.memory_space<vmem>>, vector<2x32xf32>,
    %c14 = arith.constant 14 : index
    %c0_74 = arith.constant 0 : index
    %220 = vector.load %arg10[%c14, %c0_74] : memref<16x128xf32, #tpu.memory_space<vmem>>, vector<2x128xf32>
    %c0_75 = arith.constant 0 : index
    %c0_76 = arith.constant 0 : index
    %221 = vector.load %arg3[%c0_75, %c0_76] : memref<32x128xf32, #tpu.memory_space<vmem>>, vector<32x128xf32>
    %cst_77 = arith.constant dense<0.000000e+00> : vector<2x128xf32>
    %222 = tpu.matmul %218, %221, %cst_77 {dimension_numbers = #tpu.dot_dimension_numbers<[1], [0], [0], [1], [0, 0, 1, 1], [], []>} : vector<2x32xf32>, vector<32x128xf32>, vector<2x128xf32> -> vector<2x128xf32>
    %223 = arith.addf %220, %222 : vector<2x128xf32>
    %224 = vector.extract_strided_slice %223 {offsets = [0, 0], sizes = [2, 32], strides = [1, 1]} : vector<2x128xf32> to vector<2x32xf32>
    %225 = arith.negf %224 : vector<2x32xf32>
    %226 = math.exp %225 : vector<2x32xf32>
    %cst_78 = arith.constant 1.000000e+00 : f32
    %227 = vector.broadcast %cst_78 : f32 to vector<2x32xf32>
    %228 = arith.addf %227, %226 : vector<2x32xf32>
    %229 = arith.divf %227, %228 : vector<2x32xf32>
    %230 = vector.extract_strided_slice %223 {offsets = [0, 32], sizes = [2, 32], strides = [1, 1]} : vector<2x128xf32> to vector<2x32xf32>
    %231 = arith.negf %230 : vector<2x32xf32>
    %232 = math.exp %231 : vector<2x32xf32>
    %cst_79 = arith.constant 1.000000e+00 : f32
    %233 = vector.broadcast %cst_79 : f32 to vector<2x32xf32>
    %234 = arith.addf %233, %232 : vector<2x32xf32>
    %235 = arith.divf %233, %234 : vector<2x32xf32>
    %236 = vector.extract_strided_slice %223 {offsets = [0, 64], sizes = [2, 32], strides = [1, 1]} : vector<2x128xf32> to vector<2x32xf32>
    %237 = math.tanh %236 : vector<2x32xf32>
    %238 = vector.extract_strided_slice %223 {offsets = [0, 96], sizes = [2, 32], strides = [1, 1]} : vector<2x128xf32> to vector<2x32xf32>
    %239 = arith.negf %238 : vector<2x32xf32>
    %240 = math.exp %239 : vector<2x32xf32>
    %cst_80 = arith.constant 1.000000e+00 : f32
    %241 = vector.broadcast %cst_80 : f32 to vector<2x32xf32>
    %242 = arith.addf %241, %240 : vector<2x32xf32>
    %243 = arith.divf %241, %242 : vector<2x32xf32>
    %244 = arith.mulf %235, %216 : vector<2x32xf32>
    %245 = arith.mulf %229, %237 : vector<2x32xf32>
    %246 = arith.addf %244, %245 : vector<2x32xf32>
    %247 = math.tanh %246 : vector<2x32xf32>
    %248 = arith.mulf %243, %247 : vector<2x32xf32>
    %c14_81 = arith.constant 14 : index
    %c0_82 = arith.constant 0 : index
    %249 = vector.load %arg11[%c14_81, %c0_82] : memref<16x32xf32, #tpu.memory_space<vmem>>, vector<2x32xf32>
    tpu.vector_store %arg11[%c14_81, %c0_82], %248 {strides = array<i32>} : memref<16x32xf32, #tpu.memory_space<vmem>>, vector<2x32xf32>,
    %cst_83 = arith.constant 0.000000e+00 : f32
    %250 = vector.broadcast %cst_83 : f32 to vector<16x16xf32>
    %c0_84 = arith.constant 0 : index
    %c0_85 = arith.constant 0 : index
    %251 = vector.load %arg11[%c0_84, %c0_85] : memref<16x32xf32, #tpu.memory_space<vmem>>, vector<16x32xf32>
    %252 = arith.truncf %251 : vector<16x32xf32> to vector<16x32xbf16>
    %c0_86 = arith.constant 0 : index
    %c0_87 = arith.constant 0 : index
    %c0_88 = arith.constant 0 : index
    %253 = vector.load %arg5[%c0_86, %c0_87, %c0_88] : memref<1x32x16xbf16, #tpu.memory_space<vmem>>, vector<1x32x16xbf16>
    %254 = vector.shape_cast %253 : vector<1x32x16xbf16> to vector<32x16xbf16>
    %cst_89 = arith.constant dense<0.000000e+00> : vector<16x16xf32>
    %255 = tpu.matmul %252, %254, %cst_89 {dimension_numbers = #tpu.dot_dimension_numbers<[1], [0], [0], [1], [0, 0, 1, 1], [], []>} : vector<16x32xbf16>, vector<32x16xbf16>, vector<16x16xf32> -> vector<16x16xf32>
    %256 = arith.addf %250, %255 : vector<16x16xf32>
    %c0_90 = arith.constant 0 : index
    %c0_91 = arith.constant 0 : index
    %257 = vector.load %arg6[%c0_90, %c0_91] : memref<1x16xf32, #tpu.memory_space<vmem>>, vector<1x16xf32>
    %258 = vector.broadcast %257 : vector<1x16xf32> to vector<16x16xf32>
    %259 = arith.addf %256, %258 : vector<16x16xf32>
    %cst_92 = arith.constant 0.000000e+00 : f32
    %260 = vector.broadcast %cst_92 : f32 to vector<16x16xf32>
    %261 = arith.maximumf %259, %260 : vector<16x16xf32>
    %c0_93 = arith.constant 0 : index
    %c0_94 = arith.constant 0 : index
    %262 = vector.load %arg12[%c0_93, %c0_94] : memref<16x16xf32, #tpu.memory_space<vmem>>, vector<16x16xf32>
    tpu.vector_store %arg12[%c0_93, %c0_94], %261 {strides = array<i32>} : memref<16x16xf32, #tpu.memory_space<vmem>>, vector<16x16xf32>,
    %cst_95 = arith.constant 0.000000e+00 : f32
    %263 = vector.broadcast %cst_95 : f32 to vector<16x2xf32>
    %c0_96 = arith.constant 0 : index
    %c0_97 = arith.constant 0 : index
    %264 = vector.load %arg12[%c0_96, %c0_97] : memref<16x16xf32, #tpu.memory_space<vmem>>, vector<16x16xf32>
    %265 = arith.truncf %264 : vector<16x16xf32> to vector<16x16xbf16>
    %c0_98 = arith.constant 0 : index
    %c0_99 = arith.constant 0 : index
    %c0_100 = arith.constant 0 : index
    %266 = vector.load %arg7[%c0_98, %c0_99, %c0_100] : memref<1x16x2xbf16, #tpu.memory_space<vmem>>, vector<1x16x2xbf16>
    %267 = vector.shape_cast %266 : vector<1x16x2xbf16> to vector<16x2xbf16>
    %cst_101 = arith.constant dense<0.000000e+00> : vector<16x2xf32>
    %268 = tpu.matmul %265, %267, %cst_101 {dimension_numbers = #tpu.dot_dimension_numbers<[1], [0], [0], [1], [0, 0, 1, 1], [], []>} : vector<16x16xbf16>, vector<16x2xbf16>, vector<16x2xf32> -> vector<16x2xf32>
    %269 = arith.addf %263, %268 : vector<16x2xf32>
    %c0_102 = arith.constant 0 : index
    %c0_103 = arith.constant 0 : index
    %270 = vector.load %arg8[%c0_102, %c0_103] : memref<1x2xf32, #tpu.memory_space<vmem>>, vector<1x2xf32>
    %271 = vector.broadcast %270 : vector<1x2xf32> to vector<16x2xf32>
    %272 = arith.addf %269, %271 : vector<16x2xf32>
    %c0_104 = arith.constant 0 : index
    %c0_105 = arith.constant 0 : index
    %273 = vector.load %arg13[%c0_104, %c0_105] : memref<16x2xf32, #tpu.memory_space<vmem>>, vector<16x2xf32>
    tpu.vector_store %arg13[%c0_104, %c0_105], %272 {strides = array<i32>} : memref<16x2xf32, #tpu.memory_space<vmem>>, vector<16x2xf32>,
    %c0_106 = arith.constant 0 : index
    %c0_107 = arith.constant 0 : index
    %274 = tpu.strided_load %arg13[%c0_106, %c0_107] {strides = array<i32: 2, 1>} : memref<16x2xf32, #tpu.memory_space<vmem>>, vector<8x2xf32>
    %cst_108 = arith.constant dense<0xFF800000> : vector<2xf32>
    %275 = vector.multi_reduction <maximumf>, %274, %cst_108 [0] : vector<8x2xf32> to vector<2xf32>
    %276 = vector.shape_cast %275 : vector<2xf32> to vector<1x2xf32>
    %277 = vector.broadcast %276 : vector<1x2xf32> to vector<8x2xf32>
    %278 = arith.subf %274, %277 : vector<8x2xf32>
    %279 = math.exp %278 : vector<8x2xf32>
    %cst_109 = arith.constant dense<0.000000e+00> : vector<2xf32>
    %280 = vector.multi_reduction <add>, %279, %cst_109 [0] : vector<8x2xf32> to vector<2xf32>
    %281 = vector.shape_cast %280 : vector<2xf32> to vector<1x2xf32>
    %282 = tpu.reciprocal %281 {approx = true} : vector<1x2xf32> -> vector<1x2xf32>
    %283 = vector.broadcast %282 : vector<1x2xf32> to vector<8x2xf32>
    %284 = arith.mulf %279, %283 : vector<8x2xf32>
    %285 = arith.truncf %284 : vector<8x2xf32> to vector<8x2xbf16>
    %c0_110 = arith.constant 0 : index
    %c0_111 = arith.constant 0 : index
    %286 = tpu.strided_load %arg11[%c0_110, %c0_111] {strides = array<i32: 2, 1>} : memref<16x32xf32, #tpu.memory_space<vmem>>, vector<8x32xf32>
    %287 = arith.truncf %286 : vector<8x32xf32> to vector<8x32xbf16>
    %cst_112 = arith.constant dense<0.000000e+00> : vector<2x32xf32>
    %288 = tpu.matmul %285, %287, %cst_112 {dimension_numbers = #tpu.dot_dimension_numbers<[0], [0], [1], [1], [0, 1, 1, 1], [], []>} : vector<8x2xbf16>, vector<8x32xbf16>, vector<2x32xf32> -> vector<2x32xf32>
    %c0_113 = arith.constant 0 : index
    %c0_114 = arith.constant 0 : index
    %c0_115 = arith.constant 0 : index
    %289 = vector.load %arg9[%c0_113, %c0_114, %c0_115] : memref<2x2x32xf32, #tpu.memory_space<vmem>>, vector<1x2x32xf32>
    %290 = vector.shape_cast %289 : vector<1x2x32xf32> to vector<2x32xf32>
    %291 = vector.shape_cast %288 : vector<2x32xf32> to vector<1x2x32xf32>
    tpu.vector_store %arg9[%c0_113, %c0_114, %c0_115], %291 {strides = array<i32>} : memref<2x2x32xf32, #tpu.memory_space<vmem>>, vector<1x2x32xf32>,
    %c1 = arith.constant 1 : index
    %c0_116 = arith.constant 0 : index
    %292 = tpu.strided_load %arg13[%c1, %c0_116] {strides = array<i32: 2, 1>} : memref<16x2xf32, #tpu.memory_space<vmem>>, vector<8x2xf32>
    %cst_117 = arith.constant dense<0xFF800000> : vector<2xf32>
    %293 = vector.multi_reduction <maximumf>, %292, %cst_117 [0] : vector<8x2xf32> to vector<2xf32>
    %294 = vector.shape_cast %293 : vector<2xf32> to vector<1x2xf32>
    %295 = vector.broadcast %294 : vector<1x2xf32> to vector<8x2xf32>
    %296 = arith.subf %292, %295 : vector<8x2xf32>
    %297 = math.exp %296 : vector<8x2xf32>
    %cst_118 = arith.constant dense<0.000000e+00> : vector<2xf32>
    %298 = vector.multi_reduction <add>, %297, %cst_118 [0] : vector<8x2xf32> to vector<2xf32>
    %299 = vector.shape_cast %298 : vector<2xf32> to vector<1x2xf32>
    %300 = tpu.reciprocal %299 {approx = true} : vector<1x2xf32> -> vector<1x2xf32>
    %301 = vector.broadcast %300 : vector<1x2xf32> to vector<8x2xf32>
    %302 = arith.mulf %297, %301 : vector<8x2xf32>
    %303 = arith.truncf %302 : vector<8x2xf32> to vector<8x2xbf16>
    %c1_119 = arith.constant 1 : index
    %c0_120 = arith.constant 0 : index
    %304 = tpu.strided_load %arg11[%c1_119, %c0_120] {strides = array<i32: 2, 1>} : memref<16x32xf32, #tpu.memory_space<vmem>>, vector<8x32xf32>
    %305 = arith.truncf %304 : vector<8x32xf32> to vector<8x32xbf16>
    %cst_121 = arith.constant dense<0.000000e+00> : vector<2x32xf32>
    %306 = tpu.matmul %303, %305, %cst_121 {dimension_numbers = #tpu.dot_dimension_numbers<[0], [0], [1], [1], [0, 1, 1, 1], [], []>} : vector<8x2xbf16>, vector<8x32xbf16>, vector<2x32xf32> -> vector<2x32xf32>
    %c1_122 = arith.constant 1 : index
    %c0_123 = arith.constant 0 : index
    %c0_124 = arith.constant 0 : index
    %307 = vector.load %arg9[%c1_122, %c0_123, %c0_124] : memref<2x2x32xf32, #tpu.memory_space<vmem>>, vector<1x2x32xf32>
    %308 = vector.shape_cast %307 : vector<1x2x32xf32> to vector<2x32xf32>
    %309 = vector.shape_cast %306 : vector<2x32xf32> to vector<1x2x32xf32>
    tpu.vector_store %arg9[%c1_122, %c0_123, %c0_124], %309 {strides = array<i32>} : memref<2x2x32xf32, #tpu.memory_space<vmem>>, vector<1x2x32xf32>,
    return
  }
  func.func @transform_0(%arg0: i32) -> (i32, i32, i32) {
    %c0_i32 = arith.constant 0 : i32
    %c0_i32_0 = arith.constant 0 : i32
    %c0_i32_1 = arith.constant 0 : i32
    return %arg0, %c0_i32, %c0_i32_0 : i32, i32, i32
  }
  func.func @transform_1(%arg0: i32) -> (i32, i32) {
    %c0_i32 = arith.constant 0 : i32
    %c0_i32_0 = arith.constant 0 : i32
    %c0_i32_1 = arith.constant 0 : i32
    return %c0_i32, %c0_i32_0 : i32, i32
  }
  func.func @transform_2(%arg0: i32) -> (i32, i32) {
    %c0_i32 = arith.constant 0 : i32
    %c0_i32_0 = arith.constant 0 : i32
    %c0_i32_1 = arith.constant 0 : i32
    return %c0_i32, %c0_i32_0 : i32, i32
  }
  func.func @transform_3(%arg0: i32) -> (i32, i32) {
    %c0_i32 = arith.constant 0 : i32
    %c0_i32_0 = arith.constant 0 : i32
    %c0_i32_1 = arith.constant 0 : i32
    return %c0_i32, %c0_i32_0 : i32, i32
  }
  func.func @transform_4(%arg0: i32) -> (i32, i32, i32) {
    %c0_i32 = arith.constant 0 : i32
    %c0_i32_0 = arith.constant 0 : i32
    %c0_i32_1 = arith.constant 0 : i32
    %c0_i32_2 = arith.constant 0 : i32
    return %c0_i32, %c0_i32_0, %c0_i32_1 : i32, i32, i32
  }
  func.func @transform_5(%arg0: i32) -> (i32, i32) {
    %c0_i32 = arith.constant 0 : i32
    %c0_i32_0 = arith.constant 0 : i32
    %c0_i32_1 = arith.constant 0 : i32
    return %c0_i32, %c0_i32_0 : i32, i32
  }
  func.func @transform_6(%arg0: i32) -> (i32, i32, i32) {
    %c0_i32 = arith.constant 0 : i32
    %c0_i32_0 = arith.constant 0 : i32
    %c0_i32_1 = arith.constant 0 : i32
    %c0_i32_2 = arith.constant 0 : i32
    return %c0_i32, %c0_i32_0, %c0_i32_1 : i32, i32, i32
  }
  func.func @transform_7(%arg0: i32) -> (i32, i32) {
    %c0_i32 = arith.constant 0 : i32
    %c0_i32_0 = arith.constant 0 : i32
    %c0_i32_1 = arith.constant 0 : i32
    return %c0_i32, %c0_i32_0 : i32, i32
  }
  func.func @transform_8(%arg0: i32) -> (i32, i32, i32) {
    %c0_i32 = arith.constant 0 : i32
    %c0_i32_0 = arith.constant 0 : i32
    %c0_i32_1 = arith.constant 0 : i32
    return %arg0, %c0_i32, %c0_i32_0 : i32, i32, i32
  }
}

</mosaic_0001>

<bundles_post_ra>
// kernel: tpu_custom_call.1
= control target key start
LH: loop header
LB: loop body
LE: loop exit
PB: predicated region body
PF: predicated region fallthrough
CT: control target
= control target key end

     0   :  { %13 = vsyncpa [#allocation7], 0  ;;  %s1999_s0 = inlined_call_operand.hbm [shape: f32[1,16,32], index: 0, kind: input, shape index: {}]   ;;  %s2000_s1 = inlined_call_operand.vmem [shape: f32[32,128], index: 1, kind: input, shape index: {}]   ;;  %s2001_s2 = inlined_call_operand.hbm [shape: f32[32,128], index: 2, kind: input, shape index: {}]   ;;  %s2002_s3 = inlined_call_operand.hbm [shape: f32[1,128], index: 3, kind: input, shape index: {}]   ;;  %s2003_s4 = inlined_call_operand.vmem [shape: bf16[1,32,16], index: 4, kind: input, shape index: {}]   ;;  %s2004_s5 = inlined_call_operand.vmem [shape: f32[1,16], index: 5, kind: input, shape index: {}]   ;;  %s2005_s6 = inlined_call_operand.vmem [shape: bf16[1,16,2], index: 6, kind: input, shape index: {}]   ;;  %s2006_s7 = inlined_call_operand.vmem [shape: f32[1,2], index: 7, kind: input, shape index: {}]   ;;  %s2007_s8 = inlined_call_operand.hbm [shape: f32[2,2,32], index: 8, kind: output, shape index: {}]  }
   0x1   :  { %14 = vsyncpa [#allocation10], 0 }
   0x2   :  { %15 = vsyncpa [#allocation8], 0  ;;  %s1740_s27 = smov [#allocation9]   ;;  %s1741_s29 = smov [#allocation6]  }
   0x3   :  { %s35_s28 = sshll.u32 %s1740_s27, 4  ;;  %s21_s30 = sshll.u32 %s1741_s29, 4  ;;  %s36_s28 = int_to_ptr.vmem [resolvable:$true] %s35_s28  ;;  %s22_s30 = int_to_ptr.vmem [resolvable:$true] %s21_s30 }
   0x4   :  { %s1662_s9 = scalar_lea.vmem %s36_s28, 512  ;;  %p1667_p1 = scmp.lt.s32.totalorder %s36_s28, %s36_s28 }
   0x5   :  { %p1663_p0 = scmp.ne.s32.totalorder %s36_s28, %s1662_s9  ;;  %p1668_p2 = scmp.lt.s32.totalorder %s1662_s9, %s1662_s9 }
   0x7   :  { %p1669_p3 = por %p1668_p2, %p1667_p1 }
   0x9   :  { %p1670_p4 = pnand %p1669_p3, %p1663_p0 }
   0xb   :  { %1673 = shalt.err (!%p1670_p4)
}
   0xc   :  { %s1742_s10 = smov 128   ;;  %s1743_s11 = smov 8  }
   0xd   :  { %41 = dma.hbm_to_vmem [thread:$0]  %s2001_s2, 512, %s36_s28, [#allocation10], %s1742_s10, %s1742_s10, %s1743_s11  }
   0xe   :  { %s1682_s14 = scalar_lea.vmem %s22_s30, 256  ;;  %p1687_p6 = scmp.lt.s32.totalorder %s22_s30, %s22_s30 }
   0xf   :  { %p1683_p5 = scmp.ne.s32.totalorder %s22_s30, %s1682_s14  ;;  %p1688_p7 = scmp.lt.s32.totalorder %s1682_s14, %s1682_s14 }
  0x11   :  { %p1689_p8 = por %p1688_p7, %p1687_p6 }
  0x13   :  { %p1690_p9 = pnand %p1689_p8, %p1683_p5 }
  0x15   :  { %1693 = shalt.err (!%p1690_p9)
}
  0x16   :  { %27 = dma.hbm_to_vmem [thread:$0]  %s1999_s0, 256, %s22_s30, [#allocation7], %s1742_s10, %s1742_s10, %s1743_s11  }
  0x17   :  { %s1744_s17 = smov [#allocation11]  }
  0x18   :  { %s48_s18 = sshll.u32 %s1744_s17, 4  ;;  %s49_s18 = int_to_ptr.vmem [resolvable:$true] %s48_s18 }
  0x19   :  { %s1702_s19 = scalar_lea.vmem %s49_s18, 16  ;;  %s1706_s20 = scalar_lea.vmem %s49_s18, 32 }
  0x1a   :  { %p1703_p10 = scmp.ne.s32.totalorder %s49_s18, %s1702_s19  ;;  %p1707_p11 = scmp.lt.s32.totalorder %s49_s18, %s49_s18 }
  0x1b   :  { %p1708_p12 = scmp.lt.s32.totalorder %s1706_s20, %s1702_s19 }
  0x1d   :  { %p1709_p13 = por %p1708_p12, %p1707_p11 }
  0x1f   :  { %p1710_p0 = pnand %p1709_p13, %p1703_p10 }
  0x21   :  { %1713 = shalt.err (!%p1710_p0)
}
  0x22   :  { %51 = dma.hbm_to_vmem [thread:$0]  %s2002_s3, 16, %s49_s18, [#allocation10]  }
  0x23   :  { %1734 = dma.done.wait [#allocation7], 256  }
  0x24   :  { %1735 = vsyncadd [#allocation7], 4294967040 }
  0x25   :  { %1736 = dma.done.wait [#allocation10], 528  }
  0x26   :  { %1737 = vsyncadd [#allocation10], 4294966768  ;;  %v1745_v0 = vmov 0.0   ;;  %vm1746_vm0 = vmmov 0   ;;  %vm83_vm1 = vcmask 261120   ;;  %v75_v1 = vld [vmem:[%s2000_s1 + $0x18] sm:$0xff] }
  0x27   :  { %1453 = vmatprep.subr.mxu1 %v1745_v0  ;;  %1461 = vmatprep.mubr.msk.f32.mxu1 %vm1746_vm0, %v1745_v0  ;;  %v74_v2 = vld [vmem:[%s2000_s1 + $0x10] sm:$0xff]  ;;  %v73_v3 = vld [vmem:[%s2000_s1 + $0x8] sm:$0xff]  ;;  %v70_v4 = vld [vmem:[#allocation6] sm:$0xff]  ;;  %s1748_s28 = smov 32   ;;  %vm274_vm2 = vcmask 254976   ;;  %vm1208_vm3 = vcmask 1043456  }
  0x28   :  { %1442 = vmatprep.subr.mxu0 %v75_v1  ;;  %v72_v5 = vld [vmem:[%s2000_s1] sm:$0xff]  ;;  %1450 = vmatprep.mubr.msk.f32.mxu0 %vm83_vm1, %v70_v4  ;;  %v1821_v6 = vld [vmem:[#allocation9 + $0x18] sm:$0xff]  ;;  %v1826_v8 = vld [vmem:[#allocation9 + $0x8] sm:$0xff]  ;;  %s1747_s1 = smov 64   ;;  %vm1097_vm4 = vcmask 130048   ;;  %vm1162_vm5 = vcmask 15360  }
  0x29   :  { %1443 = vmatpush3.msra.mxu0 %v75_v1  ;;  %v1823_v7 = vld [vmem:[#allocation9 + $0x10] sm:$0xff]  ;;  %1454 = vmatpush3.msra.mxu1 %v1821_v6  ;;  %v71_v9 = vld [vmem:[#allocation6 + $0x8] sm:$0xff]  ;;  %v1831_v10 = vld [vmem:[#allocation9] sm:$0xff]  ;;  %vm1204_vm6 = vcmask 64512  }
  0x2a   :  { %1444 = vmatprep.subr.mxu0 %v74_v2  ;;  %1455 = vmatprep.subr.mxu1 %v1745_v0  ;;  %v1360_v11 = vld [vmem:[#allocation11] ss:$0 sm:$0xff] }
  0x2b   :  { %1445 = vmatpush3.msra.mxu0 %v74_v2  ;;  %1456 = vmatpush3.msra.mxu1 %v1823_v7 }
  0x2c   :  { %1446 = vmatprep.subr.mxu0 %v73_v3  ;;  %1457 = vmatprep.subr.mxu1 %v1745_v0 }
  0x2d   :  { %1447 = vmatpush3.msra.mxu0 %v73_v3  ;;  %1458 = vmatpush3.msra.mxu1 %v1826_v8 }
  0x2e   :  { %1448 = vmatprep.subr.mxu0 %v72_v5  ;;  %1459 = vmatprep.subr.mxu1 %v1745_v0 }
  0x2f   :  { %1449 = vmatpush3.msra.mxu0 %v72_v5  ;;  %1460 = vmatpush3.msra.mxu1 %v1831_v10 }
  0x30   :  { %1451 = vmatmul.mubr.msk.f32.vlgmr.msra.gmra.mxu0 %vm83_vm1, %v71_v9  ;;  %1462 = vmatmul.mubr.f32.vlgmr.msra.gmra.mxu1 %v1745_v0 }
  0x31   :  { %1464 = vmatprep.subr.mxu0 %v1745_v0  ;;  %1472 = vmatprep.mubr.msk.f32.mxu0 %vm1746_vm0, %v1745_v0 }
  0x32   :  { %1465 = vmatpush3.msra.mxu0 %v1821_v6  ;;  %1475 = vmatprep.subr.mxu1 %v1745_v0 }
  0x33   :  { %1466 = vmatprep.subr.mxu0 %v1745_v0  ;;  %1476 = vmatpush3.msra.mxu1 %v1821_v6 }
  0x34   :  { %1467 = vmatpush3.msra.mxu0 %v1823_v7  ;;  %1477 = vmatprep.subr.mxu1 %v1745_v0 }
  0x35   :  { %1468 = vmatprep.subr.mxu0 %v1745_v0  ;;  %1478 = vmatpush3.msra.mxu1 %v1823_v7 }
  0x36   :  { %1469 = vmatpush3.msra.mxu0 %v1826_v8  ;;  %1479 = vmatprep.subr.mxu1 %v1745_v0 }
  0x37   :  { %1470 = vmatprep.subr.mxu0 %v1745_v0  ;;  %1480 = vmatpush3.msra.mxu1 %v1826_v8 }
  0x38   :  { %1471 = vmatpush3.msra.mxu0 %v1831_v10  ;;  %1481 = vmatprep.subr.mxu1 %v1745_v0 }
  0x39   :  { %1483 = vmatprep.mubr.msk.f32.mxu1 %vm1746_vm0, %v1745_v0  ;;  %1482 = vmatpush3.msra.mxu1 %v1831_v10 }
  0x3a   :  { %1486 = vmatprep.subr.mxu0 %v1745_v0  ;;  %1497 = vmatprep.subr.mxu1 %v1745_v0 }
  0xf0   :  { %v1452_v12 = vpop.f32.mrf.mxu0  ;;  %v241_v14 = vpop.f32.mrf.mxu1 }
  0xf1   :  { %v162_v13 = vadd.f32 %v1452_v12, %v1360_v11 }
  0xf2   :  { %v156_v15 = vpop.f32.mrf.mxu0  ;;  %v1463_v17 = vpop.f32.mrf.mxu1 }
  0xf3   :  { %166 = vst [vmem:[#allocation2 + $0x8] sm:$0xff] %v162_v13  ;;  %v157_v16 = vadd.f32 %v1360_v11, %v156_v15 }
  0xf5   :  { %165 = vst [vmem:[#allocation2] sm:$0xff] %v157_v16 }
  0xfc   :  { %v167_v18 = vld [vmem:[#allocation2] sm:$0x3]  ;;  %v276_v34 = vld [vmem:[#allocation2 + $0x2] sm:$0x3]  ;;  %v383_v52 = vld [vmem:[#allocation2 + $0x4] sm:$0x3] }
  0xfd   :  { %v245_v19 = vadd.f32 %v241_v14, %v167_v18  ;;  %v490_v11 = vld [vmem:[#allocation2 + $0x6] sm:$0x3] }
  0xff   :  { %1582 = vtanh.f32 %v245_v19  ;;  %v1363_v21 = vmul.f32 -1.442695, %v245_v19 }
 0x101   :  { %1584 = vpow2.f32 %v1363_v21 }
 0x10c   :  { %v1583_v20 = vpop.eup %1582 }
 0x10d   :  { %255 = vrot.lane.b32.xlu0 %v1583_v20, %s1747_s1 }
 0x10e   :  { %v1585_v22 = vpop.eup %1584 }
 0x10f   :  { %v249_v23 = vadd.f32 1.0, %v1585_v22 }
 0x111   :  { %1586 = vrcp.f32 %v249_v23 }
 0x11e   :  { %v1587_v24 = vpop.eup %1586 }
 0x11f   :  { %v253_v27 = vmul.f32 0.0, %v1587_v24 }
 0x17f   :  { %v256_v25 = vpop.permute.xlu0 %255 }
 0x180   :  { %v258_v26 = vmul.f32 %v1587_v24, %v256_v25 }
 0x182   :  { %260 = vrot.lane.b32.xlu0 %v258_v26, %s1748_s28 }
 0x1f4   :  { %v261_v28 = vpop.permute.xlu0 %260 }
 0x1f5   :  { %v263_v29 = vadd.f32 %v261_v28, %v253_v27 }
 0x1f7   :  { %1588 = vtanh.f32 %v263_v29 }
 0x204   :  { %v1589_v30 = vpop.eup %1588 }
 0x205   :  { %266 = vrot.lane.b32.xlu1 %v1589_v30, %s1747_s1 }
 0x277   :  { %v267_v31 = vpop.permute.xlu1 %266 }
 0x278   :  { %v269_v32 = vmul.f32 %v1587_v24, %v267_v31 }
 0x27a   :  { %271 = vrot.lane.b32.xlu1 %v269_v32, %s1748_s28 }
 0x2ec   :  { %v272_v33 = vpop.permute.xlu1 %271 }
 0x2ed   :  { %275 = vst.msk [vmem:[#allocation3] sm:$0x3] %vm274_vm2, %v272_v33  ;;  %1473 = vmatmul.mubr.msk.f32.vlgmr.msra.gmra.mxu0 %vm83_vm1, %v272_v33 }
 0x2ee   :  { %1487 = vmatpush3.msra.mxu0 %v1821_v6  ;;  %1494 = vmatprep.mubr.msk.f32.mxu0 %vm1746_vm0, %v1745_v0 }
 0x2ef   :  { %1488 = vmatprep.subr.mxu0 %v1745_v0 }
 0x2f0   :  { %1489 = vmatpush3.msra.mxu0 %v1823_v7 }
 0x2f1   :  { %1490 = vmatprep.subr.mxu0 %v1745_v0 }
 0x2f2   :  { %1491 = vmatpush3.msra.mxu0 %v1826_v8 }
 0x2f3   :  { %1492 = vmatprep.subr.mxu0 %v1745_v0 }
 0x2f4   :  { %1493 = vmatpush3.msra.mxu0 %v1831_v10 }
 0x2f5   :  { %1508 = vmatprep.subr.mxu0 %v1745_v0 }
 0x3ad   :  { %v349_v35 = vpop.f32.mrf.mxu0 }
 0x3ae   :  { %v353_v36 = vadd.f32 %v349_v35, %v276_v34 }
 0x3af   :  { %v1474_v37 = vpop.f32.mrf.mxu0 }
 0x3b0   :  { %1590 = vtanh.f32 %v353_v36  ;;  %v1365_v39 = vmul.f32 -1.442695, %v353_v36 }
 0x3b2   :  { %1592 = vpow2.f32 %v1365_v39 }
 0x3bd   :  { %v1591_v38 = vpop.eup %1590 }
 0x3be   :  { %363 = vrot.lane.b32.xlu0 %v1591_v38, %s1747_s1 }
 0x3bf   :  { %v1593_v40 = vpop.eup %1592 }
 0x3c0   :  { %v357_v41 = vadd.f32 1.0, %v1593_v40 }
 0x3c2   :  { %1594 = vrcp.f32 %v357_v41 }
 0x3cf   :  { %v1595_v42 = vpop.eup %1594 }
 0x3d0   :  { %v361_v45 = vmul.f32 %v1595_v42, %v263_v29  ;;  %v597_v29 = vld [vmem:[#allocation2 + $0x8] sm:$0x3] }
 0x430   :  { %v364_v43 = vpop.permute.xlu0 %363 }
 0x431   :  { %v366_v44 = vmul.f32 %v1595_v42, %v364_v43 }
 0x433   :  { %368 = vrot.lane.b32.xlu1 %v366_v44, %s1748_s28 }
 0x4a5   :  { %v369_v46 = vpop.permute.xlu1 %368 }
 0x4a6   :  { %v371_v47 = vadd.f32 %v369_v46, %v361_v45 }
 0x4a8   :  { %1596 = vtanh.f32 %v371_v47 }
 0x4b5   :  { %v1597_v48 = vpop.eup %1596 }
 0x4b6   :  { %374 = vrot.lane.b32.xlu0 %v1597_v48, %s1747_s1 }
 0x528   :  { %v375_v49 = vpop.permute.xlu0 %374 }
 0x529   :  { %v377_v50 = vmul.f32 %v1595_v42, %v375_v49 }
 0x52b   :  { %379 = vrot.lane.b32.xlu1 %v377_v50, %s1748_s28 }
 0x59d   :  { %v380_v51 = vpop.permute.xlu1 %379 }
 0x59e   :  { %382 = vst.msk [vmem:[#allocation3 + $0x2] sm:$0x3] %vm274_vm2, %v380_v51  ;;  %1484 = vmatmul.mubr.msk.f32.vlgmr.msra.gmra.mxu1 %vm83_vm1, %v380_v51 }
 0x59f   :  { %1498 = vmatpush3.msra.mxu1 %v1821_v6  ;;  %1505 = vmatprep.mubr.msk.f32.mxu1 %vm1746_vm0, %v1745_v0 }
 0x5a0   :  { %1499 = vmatprep.subr.mxu1 %v1745_v0 }
 0x5a1   :  { %1500 = vmatpush3.msra.mxu1 %v1823_v7 }
 0x5a2   :  { %1501 = vmatprep.subr.mxu1 %v1745_v0 }
 0x5a3   :  { %1502 = vmatpush3.msra.mxu1 %v1826_v8 }
 0x5a4   :  { %1503 = vmatprep.subr.mxu1 %v1745_v0 }
 0x5a5   :  { %1504 = vmatpush3.msra.mxu1 %v1831_v10 }
 0x5a6   :  { %1519 = vmatprep.subr.mxu1 %v1745_v0 }
 0x65e   :  { %v456_v53 = vpop.f32.mrf.mxu1 }
 0x65f   :  { %v460_v54 = vadd.f32 %v456_v53, %v383_v52 }
 0x660   :  { %v1485_v55 = vpop.f32.mrf.mxu1 }
 0x661   :  { %1598 = vtanh.f32 %v460_v54  ;;  %v1367_v57 = vmul.f32 -1.442695, %v460_v54 }
 0x663   :  { %1600 = vpow2.f32 %v1367_v57 }
 0x66e   :  { %v1599_v56 = vpop.eup %1598 }
 0x66f   :  { %470 = vrot.lane.b32.xlu0 %v1599_v56, %s1747_s1 }
 0x670   :  { %v1601_v58 = vpop.eup %1600 }
 0x671   :  { %v464_v59 = vadd.f32 1.0, %v1601_v58 }
 0x673   :  { %1602 = vrcp.f32 %v464_v59 }
 0x680   :  { %v1603_v60 = vpop.eup %1602 }
 0x681   :  { %v468_v63 = vmul.f32 %v1603_v60, %v371_v47  ;;  %v704_v47 = vld [vmem:[#allocation2 + $0xa] sm:$0x3] }
 0x6e1   :  { %v471_v61 = vpop.permute.xlu0 %470 }
 0x6e2   :  { %v473_v62 = vmul.f32 %v1603_v60, %v471_v61  ;;  %v811_v61 = vld [vmem:[#allocation2 + $0xc] sm:$0x3] }
 0x6e4   :  { %475 = vrot.lane.b32.xlu1 %v473_v62, %s1748_s28 }
 0x756   :  { %v476_v1 = vpop.permute.xlu1 %475 }
 0x757   :  { %v478_v2 = vadd.f32 %v476_v1, %v468_v63 }
 0x759   :  { %1604 = vtanh.f32 %v478_v2 }
 0x766   :  { %v1605_v3 = vpop.eup %1604 }
 0x767   :  { %481 = vrot.lane.b32.xlu0 %v1605_v3, %s1747_s1 }
 0x7d9   :  { %v482_v4 = vpop.permute.xlu0 %481 }
 0x7da   :  { %v484_v5 = vmul.f32 %v1603_v60, %v482_v4 }
 0x7dc   :  { %486 = vrot.lane.b32.xlu1 %v484_v5, %s1748_s28 }
 0x84e   :  { %v487_v9 = vpop.permute.xlu1 %486 }
 0x84f   :  { %489 = vst.msk [vmem:[#allocation3 + $0x4] sm:$0x3] %vm274_vm2, %v487_v9  ;;  %1495 = vmatmul.mubr.msk.f32.vlgmr.msra.gmra.mxu0 %vm83_vm1, %v487_v9 }
 0x850   :  { %1509 = vmatpush3.msra.mxu0 %v1821_v6  ;;  %1516 = vmatprep.mubr.msk.f32.mxu0 %vm1746_vm0, %v1745_v0 }
 0x851   :  { %1510 = vmatprep.subr.mxu0 %v1745_v0 }
 0x852   :  { %1511 = vmatpush3.msra.mxu0 %v1823_v7 }
 0x853   :  { %1512 = vmatprep.subr.mxu0 %v1745_v0 }
 0x854   :  { %1513 = vmatpush3.msra.mxu0 %v1826_v8 }
 0x855   :  { %1514 = vmatprep.subr.mxu0 %v1745_v0 }
 0x856   :  { %1515 = vmatpush3.msra.mxu0 %v1831_v10 }
 0x857   :  { %1530 = vmatprep.subr.mxu0 %v1745_v0 }
 0x90f   :  { %v563_v12 = vpop.f32.mrf.mxu0 }
 0x910   :  { %v567_v13 = vadd.f32 %v563_v12, %v490_v11 }
 0x911   :  { %v1496_v14 = vpop.f32.mrf.mxu0 }
 0x912   :  { %1606 = vtanh.f32 %v567_v13  ;;  %v1369_v16 = vmul.f32 -1.442695, %v567_v13 }
 0x914   :  { %1608 = vpow2.f32 %v1369_v16 }
 0x91f   :  { %v1607_v15 = vpop.eup %1606 }
 0x920   :  { %577 = vrot.lane.b32.xlu0 %v1607_v15, %s1747_s1 }
 0x921   :  { %v1609_v17 = vpop.eup %1608 }
 0x922   :  { %v571_v18 = vadd.f32 1.0, %v1609_v17 }
 0x924   :  { %1610 = vrcp.f32 %v571_v18 }
 0x931   :  { %v1611_v19 = vpop.eup %1610 }
 0x932   :  { %v575_v22 = vmul.f32 %v1611_v19, %v478_v2 }
 0x992   :  { %v578_v20 = vpop.permute.xlu0 %577 }
 0x993   :  { %v580_v21 = vmul.f32 %v1611_v19, %v578_v20  ;;  %v918_v20 = vld [vmem:[#allocation2 + $0xe] sm:$0x3] }
 0x995   :  { %582 = vrot.lane.b32.xlu1 %v580_v21, %s1748_s28 }
 0xa07   :  { %v583_v23 = vpop.permute.xlu1 %582 }
 0xa08   :  { %v585_v24 = vadd.f32 %v583_v23, %v575_v22 }
 0xa0a   :  { %1612 = vtanh.f32 %v585_v24 }
 0xa17   :  { %v1613_v25 = vpop.eup %1612 }
 0xa18   :  { %588 = vrot.lane.b32.xlu0 %v1613_v25, %s1747_s1 }
 0xa8a   :  { %v589_v26 = vpop.permute.xlu0 %588 }
 0xa8b   :  { %v591_v27 = vmul.f32 %v1611_v19, %v589_v26 }
 0xa8d   :  { %593 = vrot.lane.b32.xlu1 %v591_v27, %s1748_s28 }
 0xaff   :  { %v594_v28 = vpop.permute.xlu1 %593 }
 0xb00   :  { %596 = vst.msk [vmem:[#allocation3 + $0x6] sm:$0x3] %vm274_vm2, %v594_v28  ;;  %1506 = vmatmul.mubr.msk.f32.vlgmr.msra.gmra.mxu1 %vm83_vm1, %v594_v28 }
 0xb01   :  { %1520 = vmatpush3.msra.mxu1 %v1821_v6  ;;  %1527 = vmatprep.mubr.msk.f32.mxu1 %vm1746_vm0, %v1745_v0 }
 0xb02   :  { %1521 = vmatprep.subr.mxu1 %v1745_v0 }
 0xb03   :  { %1522 = vmatpush3.msra.mxu1 %v1823_v7 }
 0xb04   :  { %1523 = vmatprep.subr.mxu1 %v1745_v0 }
 0xb05   :  { %1524 = vmatpush3.msra.mxu1 %v1826_v8 }
 0xb06   :  { %1525 = vmatprep.subr.mxu1 %v1745_v0 }
 0xb07   :  { %1526 = vmatpush3.msra.mxu1 %v1831_v10 }
 0xb08   :  { %1541 = vmatprep.subr.bf16.mxu1 %v1745_v0 }
 0xbc0   :  { %v670_v30 = vpop.f32.mrf.mxu1 }
 0xbc1   :  { %v674_v31 = vadd.f32 %v670_v30, %v597_v29 }
 0xbc2   :  { %v1507_v32 = vpop.f32.mrf.mxu1 }
 0xbc3   :  { %1614 = vtanh.f32 %v674_v31  ;;  %v1371_v34 = vmul.f32 -1.442695, %v674_v31 }
 0xbc5   :  { %1616 = vpow2.f32 %v1371_v34 }
 0xbd0   :  { %v1615_v33 = vpop.eup %1614 }
 0xbd1   :  { %684 = vrot.lane.b32.xlu0 %v1615_v33, %s1747_s1 }
 0xbd2   :  { %v1617_v35 = vpop.eup %1616 }
 0xbd3   :  { %v678_v36 = vadd.f32 1.0, %v1617_v35  ;;  %v1579_v35 = vld [vmem:[%s2003_s4 + $0x8] sm:$0xff]  }
 0xbd5   :  { %1618 = vrcp.f32 %v678_v36  ;;  %v1580_v36 = vld [vmem:[%s2003_s4] sm:$0xff]  }
 0xbe2   :  { %v1619_v37 = vpop.eup %1618 }
 0xbe3   :  { %v682_v40 = vmul.f32 %v1619_v37, %v585_v24 }
 0xc43   :  { %v685_v38 = vpop.permute.xlu0 %684 }
 0xc44   :  { %v687_v39 = vmul.f32 %v1619_v37, %v685_v38 }
 0xc46   :  { %689 = vrot.lane.b32.xlu1 %v687_v39, %s1748_s28 }
 0xcb8   :  { %v690_v41 = vpop.permute.xlu1 %689 }
 0xcb9   :  { %v692_v42 = vadd.f32 %v690_v41, %v682_v40  ;;  %v1025_v40 = vld [vmem:[#allocation3] sm:$0xff] }
 0xcbb   :  { %1620 = vtanh.f32 %v692_v42 }
 0xcc8   :  { %v1621_v43 = vpop.eup %1620 }
 0xcc9   :  { %695 = vrot.lane.b32.xlu0 %v1621_v43, %s1747_s1 }
 0xd3b   :  { %v696_v44 = vpop.permute.xlu0 %695 }
 0xd3c   :  { %v698_v45 = vmul.f32 %v1619_v37, %v696_v44 }
 0xd3e   :  { %700 = vrot.lane.b32.xlu1 %v698_v45, %s1748_s28 }
 0xdb0   :  { %v701_v46 = vpop.permute.xlu1 %700 }
 0xdb1   :  { %703 = vst.msk [vmem:[#allocation3 + $0x8] sm:$0x3] %vm274_vm2, %v701_v46  ;;  %1517 = vmatmul.mubr.msk.f32.vlgmr.msra.gmra.mxu0 %vm83_vm1, %v701_v46  ;;  %v1581_v46 = vld [vmem:[%s2005_s6] sm:$0xff]  }
 0xdb2   :  { %1531 = vmatpush3.msra.mxu0 %v1821_v6  ;;  %1538 = vmatprep.mubr.msk.f32.mxu0 %vm1746_vm0, %v1745_v0 }
 0xdb3   :  { %1532 = vmatprep.subr.mxu0 %v1745_v0 }
 0xdb4   :  { %1533 = vmatpush3.msra.mxu0 %v1823_v7 }
 0xdb5   :  { %1534 = vmatprep.subr.mxu0 %v1745_v0 }
 0xdb6   :  { %1535 = vmatpush3.msra.mxu0 %v1826_v8 }
 0xdb7   :  { %1536 = vmatprep.subr.mxu0 %v1745_v0 }
 0xdb8   :  { %1537 = vmatpush3.msra.mxu0 %v1831_v10 }
 0xdb9   :  { %1549 = vmatprep.subr.bf16.mxu0 %v1745_v0 }
 0xe71   :  { %v777_v48 = vpop.f32.mrf.mxu0 }
 0xe72   :  { %v781_v6 = vadd.f32 %v777_v48, %v704_v47  ;;  %v1378_v47 = vld [vmem:[%s2004_s5] ss:$0 sm:$0xff] }
 0xe73   :  { %v1518_v49 = vpop.f32.mrf.mxu0 }
 0xe74   :  { %1622 = vtanh.f32 %v781_v6  ;;  %v1373_v51 = vmul.f32 -1.442695, %v781_v6 }
 0xe76   :  { %1624 = vpow2.f32 %v1373_v51 }
 0xe81   :  { %v1623_v50 = vpop.eup %1622 }
 0xe82   :  { %791 = vrot.lane.b32.xlu0 %v1623_v50, %s1747_s1 }
 0xe83   :  { %v1625_v7 = vpop.eup %1624 }
 0xe84   :  { %v785_v52 = vadd.f32 1.0, %v1625_v7 }
 0xe86   :  { %1626 = vrcp.f32 %v785_v52 }
 0xe93   :  { %v1627_v8 = vpop.eup %1626 }
 0xe94   :  { %v789_v10 = vmul.f32 %v1627_v8, %v692_v42 }
 0xef4   :  { %v792_v53 = vpop.permute.xlu0 %791 }
 0xef5   :  { %v794_v54 = vmul.f32 %v1627_v8, %v792_v53 }
 0xef7   :  { %796 = vrot.lane.b32.xlu1 %v794_v54, %s1748_s28 }
 0xf69   :  { %v797_v55 = vpop.permute.xlu1 %796 }
 0xf6a   :  { %v799_v56 = vadd.f32 %v797_v55, %v789_v10 }
 0xf6c   :  { %1628 = vtanh.f32 %v799_v56 }
 0xf79   :  { %v1629_v57 = vpop.eup %1628 }
 0xf7a   :  { %802 = vrot.lane.b32.xlu0 %v1629_v57, %s1747_s1 }
 0xfec   :  { %v803_v58 = vpop.permute.xlu0 %802 }
 0xfed   :  { %v805_v59 = vmul.f32 %v1627_v8, %v803_v58  ;;  %v1382_v58 = vld [vmem:[%s2006_s7] ss:$0 sm:$0xff]  ;;  %s1749_s7 = smov [#allocation12]  }
 0xfee   :  { %s1347_s14 = sshll.u32 %s1749_s7, 4  ;;  %s1348_s14 = int_to_ptr.vmem [resolvable:$true] %s1347_s14 }
 0xfef   :  { %807 = vrot.lane.b32.xlu1 %v805_v59, %s1748_s28  ;;  %s1714_s15 = scalar_lea.vmem %s1348_s14, 64  ;;  %p1719_p2 = scmp.lt.s32.totalorder %s1348_s14, %s1348_s14 }
 0xff0   :  { %p1715_p1 = scmp.ne.s32.totalorder %s1348_s14, %s1714_s15  ;;  %p1720_p3 = scmp.lt.s32.totalorder %s1714_s15, %s1714_s15 }
 0xff2   :  { %p1721_p4 = por %p1720_p3, %p1719_p2 }
 0xff4   :  { %p1722_p5 = pnand %p1721_p4, %p1715_p1 }
0x1061   :  { %v808_v60 = vpop.permute.xlu1 %807 }
0x1062   :  { %810 = vst.msk [vmem:[#allocation3 + $0xa] sm:$0x3] %vm274_vm2, %v808_v60  ;;  %1528 = vmatmul.mubr.msk.f32.vlgmr.msra.gmra.mxu1 %vm83_vm1, %v808_v60 }
0x1063   :  { %1545 = vmatprep.mubr.msk.bf16.mxu1 %vm1746_vm0, %v1745_v0  ;;  %1542 = vmatpush3.bf16.msra.mxu1 %v1579_v35 }
0x1064   :  { %1543 = vmatprep.subr.bf16.mxu1 %v1745_v0 }
0x1067   :  { %1544 = vmatpush3.bf16.msra.mxu1 %v1580_v36 }
0x1068   :  { %1555 = vmatprep.subr.bf16.mxu1 %v1745_v0 }
0x1122   :  { %v884_v62 = vpop.f32.mrf.mxu1 }
0x1123   :  { %v888_v63 = vadd.f32 %v884_v62, %v811_v61 }
0x1124   :  { %v1529_v1 = vpop.f32.mrf.mxu1 }
0x1125   :  { %1630 = vtanh.f32 %v888_v63  ;;  %v1375_v3 = vmul.f32 -1.442695, %v888_v63 }
0x1127   :  { %1632 = vpow2.f32 %v1375_v3 }
0x1132   :  { %v1631_v2 = vpop.eup %1630 }
0x1133   :  { %898 = vrot.lane.b32.xlu0 %v1631_v2, %s1747_s1 }
0x1134   :  { %v1633_v4 = vpop.eup %1632 }
0x1135   :  { %v892_v5 = vadd.f32 1.0, %v1633_v4 }
0x1137   :  { %1634 = vrcp.f32 %v892_v5 }
0x1144   :  { %v1635_v9 = vpop.eup %1634 }
0x1145   :  { %v896_v13 = vmul.f32 %v1635_v9, %v799_v56 }
0x11a5   :  { %v899_v11 = vpop.permute.xlu0 %898 }
0x11a6   :  { %v901_v12 = vmul.f32 %v1635_v9, %v899_v11 }
0x11a8   :  { %903 = vrot.lane.b32.xlu1 %v901_v12, %s1748_s28 }
0x121a   :  { %v904_v14 = vpop.permute.xlu1 %903 }
0x121b   :  { %v906_v15 = vadd.f32 %v904_v14, %v896_v13 }
0x121d   :  { %1636 = vtanh.f32 %v906_v15 }
0x122a   :  { %v1637_v16 = vpop.eup %1636 }
0x122b   :  { %909 = vrot.lane.b32.xlu0 %v1637_v16, %s1747_s1 }
0x129d   :  { %v910_v17 = vpop.permute.xlu0 %909 }
0x129e   :  { %v912_v18 = vmul.f32 %v1635_v9, %v910_v17 }
0x12a0   :  { %914 = vrot.lane.b32.xlu1 %v912_v18, %s1748_s28 }
0x1312   :  { %v915_v19 = vpop.permute.xlu1 %914 }
0x1313   :  { %917 = vst.msk [vmem:[#allocation3 + $0xc] sm:$0x3] %vm274_vm2, %v915_v19  ;;  %1539 = vmatmul.mubr.msk.f32.vlgmr.msra.gmra.mxu0 %vm83_vm1, %v915_v19 }
0x1314   :  { %1551 = vmatprep.mubr.msk.bf16.mxu0 %vm1746_vm0, %v1745_v0  ;;  %1550 = vmatpush3.bf16.msra.mxu0 %v1581_v46 }
0x1315   :  { %1561 = vmatprep.subr.bf16.mxu0 %v1745_v0 }
0x13d3   :  { %v991_v21 = vpop.f32.mrf.mxu0 }
0x13d4   :  { %v995_v22 = vadd.f32 %v991_v21, %v918_v20 }
0x13d5   :  { %v1540_v23 = vpop.f32.mrf.mxu0 }
0x13d6   :  { %1638 = vtanh.f32 %v995_v22  ;;  %v1377_v25 = vmul.f32 -1.442695, %v995_v22 }
0x13d8   :  { %1640 = vpow2.f32 %v1377_v25 }
0x13e3   :  { %v1639_v24 = vpop.eup %1638 }
0x13e4   :  { %1005 = vrot.lane.b32.xlu0 %v1639_v24, %s1747_s1 }
0x13e5   :  { %v1641_v26 = vpop.eup %1640 }
0x13e6   :  { %v999_v27 = vadd.f32 1.0, %v1641_v26 }
0x13e8   :  { %1642 = vrcp.f32 %v999_v27 }
0x13f5   :  { %v1643_v28 = vpop.eup %1642 }
0x13f6   :  { %v1003_v31 = vmul.f32 %v1643_v28, %v906_v15 }
0x1456   :  { %v1006_v29 = vpop.permute.xlu0 %1005 }
0x1457   :  { %v1008_v30 = vmul.f32 %v1643_v28, %v1006_v29 }
0x1459   :  { %1010 = vrot.lane.b32.xlu1 %v1008_v30, %s1748_s28 }
0x14cb   :  { %v1011_v32 = vpop.permute.xlu1 %1010 }
0x14cc   :  { %v1013_v33 = vadd.f32 %v1011_v32, %v1003_v31 }
0x14ce   :  { %1644 = vtanh.f32 %v1013_v33 }
0x14db   :  { %v1645_v34 = vpop.eup %1644 }
0x14dc   :  { %1016 = vrot.lane.b32.xlu0 %v1645_v34, %s1747_s1 }
0x154e   :  { %v1017_v37 = vpop.permute.xlu0 %1016 }
0x154f   :  { %v1019_v38 = vmul.f32 %v1643_v28, %v1017_v37 }
0x1551   :  { %1021 = vrot.lane.b32.xlu1 %v1019_v38, %s1748_s28 }
0x15c3   :  { %v1022_v39 = vpop.permute.xlu1 %1021 }
0x15c4   :  { %1024 = vst.msk [vmem:[#allocation3 + $0xe] sm:$0x3] %vm274_vm2, %v1022_v39 }
0x15cb   :  { %v1026_v41 = vld [vmem:[#allocation3 + $0x8] sm:$0xff] }
0x15cc   :  { %v1186_v42 = vld [vmem:[#allocation3] ss:$2 sm:$0xff]  ;;  %v1027_v43 = vpack.c.bf16 %v1026_v41, %v1025_v40  ;;  %v1276_v53 = vld [vmem:[#allocation3 + $0x1] ss:$2 sm:$0xff] }
0x15cd   :  { %v1187_v44 = vpack.c.bf16 %v1186_v42, %v1186_v42  ;;  %v1277_v54 = vpack.c.bf16 %v1276_v53, %v1276_v53 }
0x15ce   :  { %1546 = vmatmul.mubr.msk.bf16.vlgmr.msra.gmra.mxu1 %vm83_vm1, %v1027_v43 }
0x15cf   :  { %v1210_v45 = vsel %vm1208_vm3, %v1187_v44, 0  ;;  %1557 = vmatprep.mubr.msk.bf16.mxu1 %vm1746_vm0, %v1745_v0  ;;  %v1298_v57 = vsel %vm1208_vm3, %v1277_v54, 0 }
0x15d0   :  { %1556 = vmatpush3.bf16.msra.mxu1 %v1210_v45 }
0x168e   :  { %v1088_v48 = vpop.f32.mrf.mxu1 }
0x168f   :  { %v1089_v6 = vadd.f32 %v1378_v47, %v1088_v48 }
0x1690   :  { %v1547_v49 = vpop.f32.mrf.mxu1 }
0x1691   :  { %v1095_v50 = vmax.f32 %v1089_v6, 0.0 }
0x1692   :  { %v1091_v51 = vpop.f32.mrf.mxu1 }
0x1693   :  { %1098 = vst.msk [vmem:[#allocation4] sm:$0xff] %vm1097_vm4, %v1095_v50  ;;  %v1092_v7 = vadd.f32 %v1378_v47, %v1091_v51 }
0x1694   :  { %v1548_v52 = vpop.f32.mrf.mxu1 }
0x1695   :  { %v1096_v8 = vmax.f32 %v1092_v7, 0.0 }
0x1697   :  { %1099 = vst.msk [vmem:[#allocation4 + $0x8] sm:$0xff] %vm1097_vm4, %v1096_v8 }
0x169a   :  { %v1100_v10 = vld [vmem:[#allocation4] sm:$0xff] }
0x169e   :  { %v1101_v55 = vld [vmem:[#allocation4 + $0x8] sm:$0xff] }
0x169f   :  { %v1102_v56 = vpack.c.bf16 %v1101_v55, %v1100_v10 }
0x16a1   :  { %1552 = vmatmul.mubr.msk.bf16.vlgmr.msra.gmra.mxu0 %vm1097_vm4, %v1102_v56 }
0x16a2   :  { %1562 = vmatpush3.bf16.msra.mxu0 %v1298_v57  ;;  %1563 = vmatprep.mubr.msk.bf16.mxu0 %vm1746_vm0, %v1745_v0 }
0x1761   :  { %v1155_v59 = vpop.f32.mrf.mxu0 }
0x1762   :  { %v1156_v60 = vadd.f32 %v1382_v58, %v1155_v59 }
0x1763   :  { %v1553_v61 = vpop.f32.mrf.mxu0 }
0x1764   :  { %1163 = vst.msk [vmem:[#allocation5] sm:$0xff] %vm1162_vm5, %v1156_v60 }
0x1765   :  { %v1158_v62 = vpop.f32.mrf.mxu0 }
0x1766   :  { %v1159_v63 = vadd.f32 %v1382_v58, %v1158_v62 }
0x1767   :  { %v1554_v1 = vpop.f32.mrf.mxu0 }
0x1768   :  { %1164 = vst.msk [vmem:[#allocation5 + $0x8] sm:$0xff] %vm1162_vm5, %v1159_v63 }
0x176f   :  { %v1254_v2 = vld [vmem:[#allocation5 + $0x1] ss:$2 sm:$0xff]  ;;  %v1165_v3 = vld [vmem:[#allocation5] ss:$2 sm:$0xff] }
0x1770   :  { %v1255_v4 = vsel %vm1162_vm5, %v1254_v2, -inf  ;;  %v1166_v0 = vsel %vm1162_vm5, %v1165_v3, -inf }
0x1771   :  { %v1256_v5 = vrot.slane %v1255_v4, 4  ;;  %v1167_v9 = vrot.slane %v1166_v0, 4 }
0x1773   :  { %v1257_v11 = vmax.f32 %v1255_v4, %v1256_v5  ;;  %v1168_v12 = vmax.f32 %v1166_v0, %v1167_v9 }
0x1775   :  { %v1258_v13 = vrot.slane %v1257_v11, 2  ;;  %v1169_v14 = vrot.slane %v1168_v12, 2 }
0x1777   :  { %v1259_v15 = vmax.f32 %v1257_v11, %v1258_v13  ;;  %v1170_v16 = vmax.f32 %v1168_v12, %v1169_v14 }
0x1779   :  { %v1260_v17 = vrot.slane %v1259_v15, 1  ;;  %v1171_v18 = vrot.slane %v1170_v16, 1 }
0x177b   :  { %v1261_v19 = vmax.f32 %v1259_v15, %v1260_v17  ;;  %v1172_v20 = vmax.f32 %v1170_v16, %v1171_v18 }
0x177d   :  { %v1262_v21 = vsub.f32 %v1254_v2, %v1261_v19  ;;  %v1173_v22 = vsub.f32 %v1165_v3, %v1172_v20 }
0x177f   :  { %v1263_v23 = vmul.f32 1.442695, %v1262_v21  ;;  %v1174_v24 = vmul.f32 1.442695, %v1173_v22 }
0x1781   :  { %1646 = vpow2.f32 %v1263_v23 }
0x1782   :  { %1648 = vpow2.f32 %v1174_v24 }
0x178e   :  { %v1647_v25 = vpop.eup %1646 }
0x178f   :  { %v1649_v26 = vpop.eup %1648  ;;  %v1265_v27 = vsel %vm1162_vm5, %v1647_v25, 0.0 }
0x1790   :  { %v1266_v28 = vrot.slane %v1265_v27, 4  ;;  %v1176_v29 = vsel %vm1162_vm5, %v1649_v26, 0.0 }
0x1791   :  { %v1177_v30 = vrot.slane %v1176_v29, 4 }
0x1792   :  { %v1267_v31 = vadd.f32 %v1266_v28, %v1265_v27 }
0x1793   :  { %v1178_v32 = vadd.f32 %v1177_v30, %v1176_v29 }
0x1794   :  { %v1268_v33 = vrot.slane %v1267_v31, 2 }
0x1795   :  { %v1179_v34 = vrot.slane %v1178_v32, 2 }
0x1796   :  { %v1269_v35 = vadd.f32 %v1268_v33, %v1267_v31 }
0x1797   :  { %v1180_v36 = vadd.f32 %v1179_v34, %v1178_v32 }
0x1798   :  { %v1270_v37 = vrot.slane %v1269_v35, 1 }
0x1799   :  { %v1181_v38 = vrot.slane %v1180_v36, 1 }
0x179a   :  { %v1271_v39 = vadd.f32 %v1270_v37, %v1269_v35 }
0x179b   :  { %v1182_v40 = vadd.f32 %v1181_v38, %v1180_v36 }
0x179c   :  { %1650 = vrcp.f32 %v1271_v39 }
0x179d   :  { %1652 = vrcp.f32 %v1182_v40 }
0x17a9   :  { %v1651_v41 = vpop.eup %1650 }
0x17aa   :  { %v1653_v42 = vpop.eup %1652  ;;  %v1273_v43 = vmul.f32 %v1651_v41, %v1647_v25 }
0x17ab   :  { %v1184_v44 = vmul.f32 %v1653_v42, %v1649_v26 }
0x17ac   :  { %v1274_v45 = vpack.c.bf16 %v1273_v43, %v1273_v43 }
0x17ad   :  { %v1185_v46 = vpack.c.bf16 %v1184_v44, %v1184_v44 }
0x17ae   :  { %1278 = vxpose.xlu1.c.b16.start.end [1/1] (short) (narrow) %v1274_v45, 16 }
0x17af   :  { %1188 = vxpose.xlu0.c.b16.start.end [1/1] (short) (narrow) %v1185_v46, 16 }
0x1810   :  { %v1286_v47 = vpop.trf.xlu1 }
0x1811   :  { %v1196_v48 = vpop.trf.xlu0  ;;  %1564 = vmatmul.mubr.msk.bf16.vlgmr.msra.gmra.mxu0 %vm1204_vm6, %v1286_v47 }
0x1812   :  { %1558 = vmatmul.mubr.msk.bf16.vlgmr.msra.gmra.mxu1 %vm1204_vm6, %v1196_v48 }
0x18d1   :  { %v1334_v6 = vpop.f32.mrf.mxu0 }
0x18d2   :  { %v1246_v49 = vpop.f32.mrf.mxu1  ;;  %1341 = vst.msk [vmem:[#allocation12 + $0x2] sm:$0x3] %vm274_vm2, %v1334_v6 }
0x18d3   :  { %1252 = vst.msk [vmem:[#allocation12] sm:$0x3] %vm274_vm2, %v1246_v49  ;;  %v1565_v50 = vpop.f32.mrf.mxu0 }
0x18d4   :  { %v1559_v51 = vpop.f32.mrf.mxu1 }
0x18d5   :  { %1725 = shalt.err (!%p1722_p5)
}
0x18d6   :  { %s1750_s16 = smov 2   ;;  %v1337_v7 = vpop.f32.mrf.mxu0  ;;  %v1249_v52 = vpop.f32.mrf.mxu1 }
0x18d7   :  { %1353 = dma.vmem_to_hbm [thread:$0]  %s1348_s14, 64, %s2007_s8, [#allocation8], %s1748_s28, %s1748_s28, %s1750_s16  }
0x18d8   :  { %v1566_v8 = vpop.f32.mrf.mxu0  ;;  %v1560_v53 = vpop.f32.mrf.mxu1 }
0x18d9   :  { %1738 = dma.done.wait [#allocation8], 64  }
0x18da   :  { %1739 = vsyncadd [#allocation8], 4294967232 }
0x18db   :  { %1357 = vsyncpa [#allocation7], 1 }
0x18dc   :  { %1358 = vsyncpa [#allocation10], 1 }
0x18dd   :  { %1359 = vsyncpa [#allocation8], 1 }

</bundles_post_ra>
